<compile_context>
chip_gen: v5e
topology: v5e:2x2
jax: 0.10.0
libtpu: 0.0.40
codegen_flags: <defaults>
</compile_context>

<pallas_src>
import jax
import jax.numpy as jnp
from jax.experimental import pallas as pl
from jax.experimental.pallas import tpu as pltpu

# ---------------- config (small shapes consistent with the module) ------------
B, C_IN, H, W = 2, 4, 16, 16
C_OUT = 8                     # divisible by GroupNorm's 8 groups
KSIZE = 3
STRIDE = 1
PADDING = 1                   # 'same' conv for this config
NUM_DY = 4
ATTN_TEMP = 30.0
GN_GROUPS = 8
GN_EPS = 1e-5
LEAKY_SLOPE = 0.01
HIDDEN = NUM_DY if C_IN == 3 else int(C_IN * 0.25) + 1   # = 2 here
HW = H * W
NTAPS = KSIZE * KSIZE          # 9
ZROWS = NTAPS * C_OUT          # 72 rows of per-tap pre-activations

# packed small-parameter layout (columns of the (PRM_ROWS, PRM_COLS) block)
PRM_C_W1 = 0                           # cols [0, HIDDEN):      w1^T  (C_in, HIDDEN)
PRM_C_W2 = HIDDEN                      # cols [HIDDEN, 2H):     w2    (NUM_DY, HIDDEN)
PRM_C_B2 = 2 * HIDDEN                  # col  2H:               b2    (NUM_DY,)
PRM_C_GAMMA = 2 * HIDDEN + 1           # col  2H+1:             gamma (C_OUT,)
PRM_C_BETA = 2 * HIDDEN + 2            # col  2H+2:             beta  (C_OUT,)
PRM_ROWS = max(C_IN, NUM_DY, C_OUT, 8)
PRM_COLS = max(PRM_C_BETA + 1, 8)


# ---------------- fused kernel -------------------------------------------------
def make_kernel(nb):
    """Kernel processing `nb` batch elements per grid step (static unroll)."""

    def kernel(x_ref, wtap_ref, mask_ref, prm_ref, out_ref):
        # x_ref:    (nb, C_in, HW)           lane-dense activations
        # wtap_ref: (NUM_DY, ZROWS, C_in)    candidate filters, weights-first layout
        # mask_ref: (ZROWS, HW)              zero-padding validity masks (per tap row)
        # prm_ref:  (PRM_ROWS, PRM_COLS)     packed w1^T | w2 | b2 | gamma | beta
        # out_ref:  (nb, C_OUT, HW)
        prm = prm_ref[...]
        w1t = prm[0:C_IN, PRM_C_W1:PRM_C_W1 + HIDDEN]        # (C_in, HIDDEN)
        w2m = prm[0:NUM_DY, PRM_C_W2:PRM_C_W2 + HIDDEN]      # (NUM_DY, HIDDEN)
        b2v = prm[0:NUM_DY, PRM_C_B2:PRM_C_B2 + 1]           # (NUM_DY, 1)
        gam = prm[0:C_OUT, PRM_C_GAMMA:PRM_C_GAMMA + 1]      # (C_OUT, 1)
        bet = prm[0:C_OUT, PRM_C_BETA:PRM_C_BETA + 1]        # (C_OUT, 1)

        for bi in range(nb):                                  # static unroll
            x = x_ref[bi]                                     # (C_in, HW)

            # ---- attention on VPU/XLU/EUP only (no micro-MXU dots) ------------
            pooled = jnp.mean(x, axis=1, keepdims=True)       # (C_in, 1)
            hid = jnp.maximum(
                jnp.sum(w1t * pooled, axis=0, keepdims=True), 0.0)   # (1, HIDDEN)
            s = jnp.sum(w2m * hid, axis=1, keepdims=True) + b2v      # (NUM_DY, 1)
            # Un-normalized softmax: GroupNorm below removes the uniform
            # per-batch scale, so the max-subtraction and denominator are
            # dropped from the serial critical path (eps effect ~1e-6).
            attn = jnp.exp(s * (1.0 / ATTN_TEMP))             # (NUM_DY, 1)

            # ---- dynamic filter in weights-first layout: filt[t*C_OUT+o, c] ---
            filt = attn[0:1, 0:1] * wtap_ref[0]
            for d in range(1, NUM_DY):
                filt = filt + attn[d:d + 1, 0:1] * wtap_ref[d]        # (ZROWS, C_in)

            # ---- ONE MXU pass: per-tap pre-activations for all out channels ---
            z = jnp.dot(filt, x, preferred_element_type=jnp.float32)  # (ZROWS, HW)

            # ---- gather the 9 taps: XLU lane rolls + precomputed pad masks ----
            acc = None
            for t in range(NTAPS):
                di = t // KSIZE - PADDING
                dj = t % KSIZE - PADDING
                off = di * W + dj
                zt = z[t * C_OUT:(t + 1) * C_OUT, :]                   # (C_OUT, HW)
                if off != 0:
                    zt = pltpu.roll(zt, shift=(-off) % HW, axis=1)
                term = mask_ref[t * C_OUT:(t + 1) * C_OUT, :] * zt
                acc = term if acc is None else acc + term              # (C_OUT, HW)

            # ---- GroupNorm(8) + affine + LeakyReLU(0.01) ----------------------
            cpg = C_OUT // GN_GROUPS
            yg = acc.reshape(GN_GROUPS, cpg * HW)            # identity here (cpg=1)
            mu = jnp.mean(yg, axis=1, keepdims=True)
            var = jnp.mean((yg - mu) * (yg - mu), axis=1, keepdims=True)
            yn = ((yg - mu) * jax.lax.rsqrt(var + GN_EPS)).reshape(C_OUT, HW)
            yn = yn * gam + bet
            out_ref[bi] = jnp.where(yn > 0.0, yn, LEAKY_SLOPE * yn)

    return kernel


# ---------------- wrapper ------------------------------------------------------
def _tensorcores_per_device():
    """Best-effort TC-count probe; every return value yields a correct kernel."""
    try:
        kind = jax.devices()[0].device_kind.lower()
    except Exception:
        return 1
    return 2 if any(tag in kind for tag in ("v4", "v5p", "v7", "7x")) else 1


def dy_conv_block_forward(x, w1, w2, b2, dyn_weights, gamma, beta):
    b, c_in, h, w = x.shape
    assert (c_in, h, w) == (C_IN, H, W)
    # TODO(synk): general stride/padding needs a strided gather path; this fused
    # kernel implements the stride=1 'same' 3x3 configuration used here.
    assert STRIDE == 1 and 2 * PADDING == KSIZE - 1

    x_flat = x.reshape(b, c_in, HW)

    # Weights-first filter bank: wtap[d, (i*K+j)*C_OUT + o, c] = W[d, o, c, i, j].
    wtap = jnp.transpose(dyn_weights, (0, 3, 4, 1, 2)).reshape(NUM_DY, ZROWS, C_IN)

    # Zero-padding validity masks, one row per (tap, out-channel), matching z rows.
    pos = jnp.arange(HW, dtype=jnp.int32)
    rr = pos // W
    cc = pos % W
    rows = []
    for i in range(KSIZE):
        for j in range(KSIZE):
            di, dj = i - PADDING, j - PADDING
            rows.append((rr + di >= 0) & (rr + di < H) &
                        (cc + dj >= 0) & (cc + dj < W))
    mask = jnp.repeat(jnp.stack(rows).astype(jnp.float32), C_OUT, axis=0)  # (ZROWS, HW)

    # Pack all tiny parameters into a single block (one DMA instead of five).
    prm = jnp.zeros((PRM_ROWS, PRM_COLS), jnp.float32)
    prm = prm.at[0:C_IN, PRM_C_W1:PRM_C_W1 + HIDDEN].set(w1.T)
    prm = prm.at[0:NUM_DY, PRM_C_W2:PRM_C_W2 + HIDDEN].set(w2)
    prm = prm.at[0:NUM_DY, PRM_C_B2].set(b2)
    prm = prm.at[0:C_OUT, PRM_C_GAMMA].set(gamma)
    prm = prm.at[0:C_OUT, PRM_C_BETA].set(beta)

    # Dual-TC parts (v7x-style): one batch element per "parallel" grid step.
    # Single-TC parts (v5e/v6e): fold the whole batch into one grid step to
    # avoid paying the fixed per-step pipeline cost per batch element.
    nb = 1 if (_tensorcores_per_device() > 1 and b > 1) else b
    steps = b // nb

    y = pl.pallas_call(
        make_kernel(nb),
        out_shape=jax.ShapeDtypeStruct((b, C_OUT, HW), jnp.float32),
        grid=(steps,),
        in_specs=[
            pl.BlockSpec((nb, c_in, HW), lambda s: (s, 0, 0)),
            pl.BlockSpec((NUM_DY, ZROWS, C_IN), lambda s: (0, 0, 0)),
            pl.BlockSpec((ZROWS, HW), lambda s: (0, 0)),
            pl.BlockSpec((PRM_ROWS, PRM_COLS), lambda s: (0, 0)),
        ],
        out_specs=pl.BlockSpec((nb, C_OUT, HW), lambda s: (s, 0, 0)),
        compiler_params=pltpu.CompilerParams(
            dimension_semantics=("parallel",)),
    )(x_flat, wtap, mask, prm)

    return y.reshape(b, C_OUT, h, w)


# ---------------- pure-JAX reference for verification ---------------------------
def reference(x, w1, w2, b2, dyn_weights, gamma, beta):
    b, c_in, h, w = x.shape
    pooled = x.mean(axis=(2, 3))
    hdn = jax.nn.relu(pooled @ w1.T)
    s = hdn @ w2.T + b2
    attn = jax.nn.softmax(s / ATTN_TEMP, axis=1)
    filters = attn @ dyn_weights.reshape(NUM_DY, -1)
    filters = filters.reshape(b * C_OUT, c_in, KSIZE, KSIZE)
    x_g = x.reshape(1, b * c_in, h, w)
    y = jax.lax.conv_general_dilated(
        x_g, filters, window_strides=(STRIDE, STRIDE),
        padding=[(PADDING, PADDING)] * 2,
        dimension_numbers=("NCHW", "OIHW", "NCHW"),
        feature_group_count=b)
    y = y.reshape(b, C_OUT, y.shape[2], y.shape[3])
    yg = y.reshape(b, GN_GROUPS, C_OUT // GN_GROUPS, y.shape[2], y.shape[3])
    mean = yg.mean(axis=(2, 3, 4), keepdims=True)
    var = yg.var(axis=(2, 3, 4), keepdims=True)
    yn = ((yg - mean) / jnp.sqrt(var + GN_EPS)).reshape(y.shape)
    yn = yn * gamma[None, :, None, None] + beta[None, :, None, None]
    return jnp.where(yn > 0, yn, LEAKY_SLOPE * yn)


if __name__ == "__main__":
    key = jax.random.PRNGKey(0)
    k1, k2, k3, k4, k5 = jax.random.split(key, 5)
    # deterministic synthetic parameters (shapes from the module's __init__)
    x = jax.random.normal(k1, (B, C_IN, H, W), jnp.float32)
    w1 = jax.random.normal(k2, (HIDDEN, C_IN), jnp.float32) * 0.5      # 1x1 conv, no bias
    w2 = jax.random.normal(k3, (NUM_DY, HIDDEN), jnp.float32) * 0.5    # 1x1 conv
    b2 = jax.random.normal(k4, (NUM_DY,), jnp.float32) * 0.1
    dyn_weights = jax.random.normal(
        k5, (NUM_DY, C_OUT, C_IN, KSIZE, KSIZE), jnp.float32)
    gamma = jnp.ones((C_OUT,), jnp.float32)                            # GroupNorm affine
    beta = jnp.zeros((C_OUT,), jnp.float32)

    y = dy_conv_block_forward(x, w1, w2, b2, dyn_weights, gamma, beta)
    y = jax.block_until_ready(y)

    with jax.default_matmul_precision("float32"):
        y_ref = reference(x, w1, w2, b2, dyn_weights, gamma, beta)
    y_ref = jax.block_until_ready(y_ref)

    err = float(jnp.max(jnp.abs(y - y_ref)))
    assert jnp.allclose(y, y_ref, rtol=2e-3, atol=2e-3), err
    print("KERNEL_OK")
</pallas_src>

<mosaic_0001>
module attributes {stable_mosaic.version = 11 : i64} {
  func.func @kernel(%arg0: i32, %arg1: memref<2x4x256xf32, #tpu.memory_space<vmem>>, %arg2: memref<4x72x4xf32, #tpu.memory_space<vmem>>, %arg3: memref<72x256xf32, #tpu.memory_space<vmem>>, %arg4: memref<8x8xf32, #tpu.memory_space<vmem>>, %arg5: memref<2x8x256xf32, #tpu.memory_space<vmem>>) attributes {dimension_semantics = [#tpu.dimension_semantics<parallel>], iteration_bounds = array<i64: 1>, scalar_prefetch = 0 : i64, scratch_operands = 0 : i64, tpu.core_type = #tpu.core_type<tc>, window_params = [{transform_indices = @transform_0, window_bounds = array<i64: 2, 4, 256>}, {pipeline_mode = #tpu.pipeline_mode<synchronous>, transform_indices = @transform_1, window_bounds = array<i64: 4, 72, 4>}, {pipeline_mode = #tpu.pipeline_mode<synchronous>, transform_indices = @transform_2, window_bounds = array<i64: 72, 256>}, {pipeline_mode = #tpu.pipeline_mode<synchronous>, transform_indices = @transform_3, window_bounds = array<i64: 8, 8>}, {transform_indices = @transform_4, window_bounds = array<i64: 2, 8, 256>}]} {
    %c0 = arith.constant 0 : index
    %c0_0 = arith.constant 0 : index
    %0 = vector.load %arg4[%c0, %c0_0] : memref<8x8xf32, #tpu.memory_space<vmem>>, vector<8x8xf32>
    %1 = vector.extract_strided_slice %0 {offsets = [0, 0], sizes = [4, 2], strides = [1, 1]} : vector<8x8xf32> to vector<4x2xf32>
    %2 = vector.extract_strided_slice %0 {offsets = [0, 2], sizes = [4, 2], strides = [1, 1]} : vector<8x8xf32> to vector<4x2xf32>
    %3 = vector.extract_strided_slice %0 {offsets = [0, 4], sizes = [4, 1], strides = [1, 1]} : vector<8x8xf32> to vector<4x1xf32>
    %4 = vector.extract_strided_slice %0 {offsets = [0, 5], sizes = [8, 1], strides = [1, 1]} : vector<8x8xf32> to vector<8x1xf32>
    %5 = vector.extract_strided_slice %0 {offsets = [0, 6], sizes = [8, 1], strides = [1, 1]} : vector<8x8xf32> to vector<8x1xf32>
    %c0_1 = arith.constant 0 : index
    %c0_2 = arith.constant 0 : index
    %c0_3 = arith.constant 0 : index
    %6 = vector.load %arg1[%c0_1, %c0_2, %c0_3] : memref<2x4x256xf32, #tpu.memory_space<vmem>>, vector<1x4x256xf32>
    %7 = vector.shape_cast %6 : vector<1x4x256xf32> to vector<4x256xf32>
    %cst = arith.constant dense<0.000000e+00> : vector<4xf32>
    %8 = vector.multi_reduction <add>, %7, %cst [1] : vector<4x256xf32> to vector<4xf32>
    %9 = vector.shape_cast %8 : vector<4xf32> to vector<4x1xf32>
    %cst_4 = arith.constant 2.560000e+02 : f32
    %10 = vector.broadcast %cst_4 : f32 to vector<4x1xf32>
    %11 = arith.divf %9, %10 : vector<4x1xf32>
    %12 = vector.broadcast %11 : vector<4x1xf32> to vector<4x2xf32>
    %13 = arith.mulf %1, %12 : vector<4x2xf32>
    %cst_5 = arith.constant dense<0.000000e+00> : vector<2xf32>
    %14 = vector.multi_reduction <add>, %13, %cst_5 [0] : vector<4x2xf32> to vector<2xf32>
    %15 = vector.shape_cast %14 : vector<2xf32> to vector<1x2xf32>
    %cst_6 = arith.constant 0.000000e+00 : f32
    %16 = vector.broadcast %cst_6 : f32 to vector<1x2xf32>
    %17 = arith.maximumf %15, %16 : vector<1x2xf32>
    %18 = vector.broadcast %17 : vector<1x2xf32> to vector<4x2xf32>
    %19 = arith.mulf %2, %18 : vector<4x2xf32>
    %cst_7 = arith.constant dense<0.000000e+00> : vector<4xf32>
    %20 = vector.multi_reduction <add>, %19, %cst_7 [1] : vector<4x2xf32> to vector<4xf32>
    %21 = vector.shape_cast %20 : vector<4xf32> to vector<4x1xf32>
    %22 = arith.addf %21, %3 : vector<4x1xf32>
    %cst_8 = arith.constant 0.0333333351 : f32
    %23 = vector.broadcast %cst_8 : f32 to vector<4x1xf32>
    %24 = arith.mulf %22, %23 : vector<4x1xf32>
    %25 = math.exp %24 : vector<4x1xf32>
    %26 = vector.extract_strided_slice %25 {offsets = [0, 0], sizes = [1, 1], strides = [1, 1]} : vector<4x1xf32> to vector<1x1xf32>
    %c0_9 = arith.constant 0 : index
    %c0_10 = arith.constant 0 : index
    %c0_11 = arith.constant 0 : index
    %27 = vector.load %arg2[%c0_9, %c0_10, %c0_11] : memref<4x72x4xf32, #tpu.memory_space<vmem>>, vector<1x72x4xf32>
    %28 = vector.shape_cast %27 : vector<1x72x4xf32> to vector<72x4xf32>
    %29 = vector.broadcast %26 : vector<1x1xf32> to vector<72x4xf32>
    %30 = arith.mulf %29, %28 : vector<72x4xf32>
    %31 = vector.extract_strided_slice %25 {offsets = [1, 0], sizes = [1, 1], strides = [1, 1]} : vector<4x1xf32> to vector<1x1xf32>
    %c1 = arith.constant 1 : index
    %c0_12 = arith.constant 0 : index
    %c0_13 = arith.constant 0 : index
    %32 = vector.load %arg2[%c1, %c0_12, %c0_13] : memref<4x72x4xf32, #tpu.memory_space<vmem>>, vector<1x72x4xf32>
    %33 = vector.shape_cast %32 : vector<1x72x4xf32> to vector<72x4xf32>
    %34 = vector.broadcast %31 : vector<1x1xf32> to vector<72x4xf32>
    %35 = arith.mulf %34, %33 : vector<72x4xf32>
    %36 = arith.addf %30, %35 : vector<72x4xf32>
    %37 = vector.extract_strided_slice %25 {offsets = [2, 0], sizes = [1, 1], strides = [1, 1]} : vector<4x1xf32> to vector<1x1xf32>
    %c2 = arith.constant 2 : index
    %c0_14 = arith.constant 0 : index
    %c0_15 = arith.constant 0 : index
    %38 = vector.load %arg2[%c2, %c0_14, %c0_15] : memref<4x72x4xf32, #tpu.memory_space<vmem>>, vector<1x72x4xf32>
    %39 = vector.shape_cast %38 : vector<1x72x4xf32> to vector<72x4xf32>
    %40 = vector.broadcast %37 : vector<1x1xf32> to vector<72x4xf32>
    %41 = arith.mulf %40, %39 : vector<72x4xf32>
    %42 = arith.addf %36, %41 : vector<72x4xf32>
    %43 = vector.extract_strided_slice %25 {offsets = [3, 0], sizes = [1, 1], strides = [1, 1]} : vector<4x1xf32> to vector<1x1xf32>
    %c3 = arith.constant 3 : index
    %c0_16 = arith.constant 0 : index
    %c0_17 = arith.constant 0 : index
    %44 = vector.load %arg2[%c3, %c0_16, %c0_17] : memref<4x72x4xf32, #tpu.memory_space<vmem>>, vector<1x72x4xf32>
    %45 = vector.shape_cast %44 : vector<1x72x4xf32> to vector<72x4xf32>
    %46 = vector.broadcast %43 : vector<1x1xf32> to vector<72x4xf32>
    %47 = arith.mulf %46, %45 : vector<72x4xf32>
    %48 = arith.addf %42, %47 : vector<72x4xf32>
    %cst_18 = arith.constant dense<0.000000e+00> : vector<72x256xf32>
    %49 = tpu.matmul %48, %7, %cst_18 {dimension_numbers = #tpu.dot_dimension_numbers<[1], [0], [0], [1], [0, 0, 1, 1], [], []>} : vector<72x4xf32>, vector<4x256xf32>, vector<72x256xf32> -> vector<72x256xf32>
    %50 = vector.extract_strided_slice %49 {offsets = [0, 0], sizes = [8, 256], strides = [1, 1]} : vector<72x256xf32> to vector<8x256xf32>
    %c17_i32 = arith.constant 17 : i32
    %51 = tpu.dynamic_rotate %50 by %c17_i32 dim 1 : vector<8x256xf32>, i32 -> vector<8x256xf32>
    %c0_19 = arith.constant 0 : index
    %c0_20 = arith.constant 0 : index
    %52 = vector.load %arg3[%c0_19, %c0_20] : memref<72x256xf32, #tpu.memory_space<vmem>>, vector<8x256xf32>
    %53 = arith.mulf %52, %51 : vector<8x256xf32>
    %54 = vector.extract_strided_slice %49 {offsets = [8, 0], sizes = [8, 256], strides = [1, 1]} : vector<72x256xf32> to vector<8x256xf32>
    %c16_i32 = arith.constant 16 : i32
    %55 = tpu.dynamic_rotate %54 by %c16_i32 dim 1 : vector<8x256xf32>, i32 -> vector<8x256xf32>
    %c8 = arith.constant 8 : index
    %c0_21 = arith.constant 0 : index
    %56 = vector.load %arg3[%c8, %c0_21] : memref<72x256xf32, #tpu.memory_space<vmem>>, vector<8x256xf32>
    %57 = arith.mulf %56, %55 : vector<8x256xf32>
    %58 = arith.addf %53, %57 : vector<8x256xf32>
    %59 = vector.extract_strided_slice %49 {offsets = [16, 0], sizes = [8, 256], strides = [1, 1]} : vector<72x256xf32> to vector<8x256xf32>
    %c15_i32 = arith.constant 15 : i32
    %60 = tpu.dynamic_rotate %59 by %c15_i32 dim 1 : vector<8x256xf32>, i32 -> vector<8x256xf32>
    %c16 = arith.constant 16 : index
    %c0_22 = arith.constant 0 : index
    %61 = vector.load %arg3[%c16, %c0_22] : memref<72x256xf32, #tpu.memory_space<vmem>>, vector<8x256xf32>
    %62 = arith.mulf %61, %60 : vector<8x256xf32>
    %63 = arith.addf %58, %62 : vector<8x256xf32>
    %64 = vector.extract_strided_slice %49 {offsets = [24, 0], sizes = [8, 256], strides = [1, 1]} : vector<72x256xf32> to vector<8x256xf32>
    %c1_i32 = arith.constant 1 : i32
    %65 = tpu.dynamic_rotate %64 by %c1_i32 dim 1 : vector<8x256xf32>, i32 -> vector<8x256xf32>
    %c24 = arith.constant 24 : index
    %c0_23 = arith.constant 0 : index
    %66 = vector.load %arg3[%c24, %c0_23] : memref<72x256xf32, #tpu.memory_space<vmem>>, vector<8x256xf32>
    %67 = arith.mulf %66, %65 : vector<8x256xf32>
    %68 = arith.addf %63, %67 : vector<8x256xf32>
    %69 = vector.extract_strided_slice %49 {offsets = [32, 0], sizes = [8, 256], strides = [1, 1]} : vector<72x256xf32> to vector<8x256xf32>
    %c32 = arith.constant 32 : index
    %c0_24 = arith.constant 0 : index
    %70 = vector.load %arg3[%c32, %c0_24] : memref<72x256xf32, #tpu.memory_space<vmem>>, vector<8x256xf32>
    %71 = arith.mulf %70, %69 : vector<8x256xf32>
    %72 = arith.addf %68, %71 : vector<8x256xf32>
    %73 = vector.extract_strided_slice %49 {offsets = [40, 0], sizes = [8, 256], strides = [1, 1]} : vector<72x256xf32> to vector<8x256xf32>
    %c255_i32 = arith.constant 255 : i32
    %74 = tpu.dynamic_rotate %73 by %c255_i32 dim 1 : vector<8x256xf32>, i32 -> vector<8x256xf32>
    %c40 = arith.constant 40 : index
    %c0_25 = arith.constant 0 : index
    %75 = vector.load %arg3[%c40, %c0_25] : memref<72x256xf32, #tpu.memory_space<vmem>>, vector<8x256xf32>
    %76 = arith.mulf %75, %74 : vector<8x256xf32>
    %77 = arith.addf %72, %76 : vector<8x256xf32>
    %78 = vector.extract_strided_slice %49 {offsets = [48, 0], sizes = [8, 256], strides = [1, 1]} : vector<72x256xf32> to vector<8x256xf32>
    %c241_i32 = arith.constant 241 : i32
    %79 = tpu.dynamic_rotate %78 by %c241_i32 dim 1 : vector<8x256xf32>, i32 -> vector<8x256xf32>
    %c48 = arith.constant 48 : index
    %c0_26 = arith.constant 0 : index
    %80 = vector.load %arg3[%c48, %c0_26] : memref<72x256xf32, #tpu.memory_space<vmem>>, vector<8x256xf32>
    %81 = arith.mulf %80, %79 : vector<8x256xf32>
    %82 = arith.addf %77, %81 : vector<8x256xf32>
    %83 = vector.extract_strided_slice %49 {offsets = [56, 0], sizes = [8, 256], strides = [1, 1]} : vector<72x256xf32> to vector<8x256xf32>
    %c240_i32 = arith.constant 240 : i32
    %84 = tpu.dynamic_rotate %83 by %c240_i32 dim 1 : vector<8x256xf32>, i32 -> vector<8x256xf32>
    %c56 = arith.constant 56 : index
    %c0_27 = arith.constant 0 : index
    %85 = vector.load %arg3[%c56, %c0_27] : memref<72x256xf32, #tpu.memory_space<vmem>>, vector<8x256xf32>
    %86 = arith.mulf %85, %84 : vector<8x256xf32>
    %87 = arith.addf %82, %86 : vector<8x256xf32>
    %88 = vector.extract_strided_slice %49 {offsets = [64, 0], sizes = [8, 256], strides = [1, 1]} : vector<72x256xf32> to vector<8x256xf32>
    %c239_i32 = arith.constant 239 : i32
    %89 = tpu.dynamic_rotate %88 by %c239_i32 dim 1 : vector<8x256xf32>, i32 -> vector<8x256xf32>
    %c64 = arith.constant 64 : index
    %c0_28 = arith.constant 0 : index
    %90 = vector.load %arg3[%c64, %c0_28] : memref<72x256xf32, #tpu.memory_space<vmem>>, vector<8x256xf32>
    %91 = arith.mulf %90, %89 : vector<8x256xf32>
    %92 = arith.addf %87, %91 : vector<8x256xf32>
    %cst_29 = arith.constant dense<0.000000e+00> : vector<8xf32>
    %93 = vector.multi_reduction <add>, %92, %cst_29 [1] : vector<8x256xf32> to vector<8xf32>
    %94 = vector.shape_cast %93 : vector<8xf32> to vector<8x1xf32>
    %cst_30 = arith.constant 2.560000e+02 : f32
    %95 = vector.broadcast %cst_30 : f32 to vector<8x1xf32>
    %96 = arith.divf %94, %95 : vector<8x1xf32>
    %97 = vector.broadcast %96 : vector<8x1xf32> to vector<8x256xf32>
    %98 = arith.subf %92, %97 : vector<8x256xf32>
    %99 = vector.broadcast %96 : vector<8x1xf32> to vector<8x256xf32>
    %100 = arith.subf %92, %99 : vector<8x256xf32>
    %101 = arith.mulf %98, %100 : vector<8x256xf32>
    %cst_31 = arith.constant dense<0.000000e+00> : vector<8xf32>
    %102 = vector.multi_reduction <add>, %101, %cst_31 [1] : vector<8x256xf32> to vector<8xf32>
    %103 = vector.shape_cast %102 : vector<8xf32> to vector<8x1xf32>
    %cst_32 = arith.constant 2.560000e+02 : f32
    %104 = vector.broadcast %cst_32 : f32 to vector<8x1xf32>
    %105 = arith.divf %103, %104 : vector<8x1xf32>
    %106 = vector.broadcast %96 : vector<8x1xf32> to vector<8x256xf32>
    %107 = arith.subf %92, %106 : vector<8x256xf32>
    %cst_33 = arith.constant 9.99999974E-6 : f32
    %108 = vector.broadcast %cst_33 : f32 to vector<8x1xf32>
    %109 = arith.addf %105, %108 : vector<8x1xf32>
    %110 = math.rsqrt %109 : vector<8x1xf32>
    %111 = vector.broadcast %110 : vector<8x1xf32> to vector<8x256xf32>
    %112 = arith.mulf %107, %111 : vector<8x256xf32>
    %113 = vector.broadcast %4 : vector<8x1xf32> to vector<8x256xf32>
    %114 = arith.mulf %112, %113 : vector<8x256xf32>
    %115 = vector.broadcast %5 : vector<8x1xf32> to vector<8x256xf32>
    %116 = arith.addf %114, %115 : vector<8x256xf32>
    %cst_34 = arith.constant 0.000000e+00 : f32
    %117 = vector.broadcast %cst_34 : f32 to vector<8x256xf32>
    %118 = arith.cmpf ogt, %116, %117 : vector<8x256xf32>
    %cst_35 = arith.constant 0.00999999977 : f32
    %119 = vector.broadcast %cst_35 : f32 to vector<8x256xf32>
    %120 = arith.mulf %119, %116 : vector<8x256xf32>
    %121 = arith.select %118, %116, %120 : vector<8x256xi1>, vector<8x256xf32>
    %c0_36 = arith.constant 0 : index
    %c0_37 = arith.constant 0 : index
    %c0_38 = arith.constant 0 : index
    %122 = vector.load %arg5[%c0_36, %c0_37, %c0_38] : memref<2x8x256xf32, #tpu.memory_space<vmem>>, vector<1x8x256xf32>
    %123 = vector.shape_cast %122 : vector<1x8x256xf32> to vector<8x256xf32>
    %124 = vector.shape_cast %121 : vector<8x256xf32> to vector<1x8x256xf32>
    tpu.vector_store %arg5[%c0_36, %c0_37, %c0_38], %124 {strides = array<i32>} : memref<2x8x256xf32, #tpu.memory_space<vmem>>, vector<1x8x256xf32>,
    %c1_39 = arith.constant 1 : index
    %c0_40 = arith.constant 0 : index
    %c0_41 = arith.constant 0 : index
    %125 = vector.load %arg1[%c1_39, %c0_40, %c0_41] : memref<2x4x256xf32, #tpu.memory_space<vmem>>, vector<1x4x256xf32>
    %126 = vector.shape_cast %125 : vector<1x4x256xf32> to vector<4x256xf32>
    %cst_42 = arith.constant dense<0.000000e+00> : vector<4xf32>
    %127 = vector.multi_reduction <add>, %126, %cst_42 [1] : vector<4x256xf32> to vector<4xf32>
    %128 = vector.shape_cast %127 : vector<4xf32> to vector<4x1xf32>
    %cst_43 = arith.constant 2.560000e+02 : f32
    %129 = vector.broadcast %cst_43 : f32 to vector<4x1xf32>
    %130 = arith.divf %128, %129 : vector<4x1xf32>
    %131 = vector.broadcast %130 : vector<4x1xf32> to vector<4x2xf32>
    %132 = arith.mulf %1, %131 : vector<4x2xf32>
    %cst_44 = arith.constant dense<0.000000e+00> : vector<2xf32>
    %133 = vector.multi_reduction <add>, %132, %cst_44 [0] : vector<4x2xf32> to vector<2xf32>
    %134 = vector.shape_cast %133 : vector<2xf32> to vector<1x2xf32>
    %cst_45 = arith.constant 0.000000e+00 : f32
    %135 = vector.broadcast %cst_45 : f32 to vector<1x2xf32>
    %136 = arith.maximumf %134, %135 : vector<1x2xf32>
    %137 = vector.broadcast %136 : vector<1x2xf32> to vector<4x2xf32>
    %138 = arith.mulf %2, %137 : vector<4x2xf32>
    %cst_46 = arith.constant dense<0.000000e+00> : vector<4xf32>
    %139 = vector.multi_reduction <add>, %138, %cst_46 [1] : vector<4x2xf32> to vector<4xf32>
    %140 = vector.shape_cast %139 : vector<4xf32> to vector<4x1xf32>
    %141 = arith.addf %140, %3 : vector<4x1xf32>
    %cst_47 = arith.constant 0.0333333351 : f32
    %142 = vector.broadcast %cst_47 : f32 to vector<4x1xf32>
    %143 = arith.mulf %141, %142 : vector<4x1xf32>
    %144 = math.exp %143 : vector<4x1xf32>
    %145 = vector.extract_strided_slice %144 {offsets = [0, 0], sizes = [1, 1], strides = [1, 1]} : vector<4x1xf32> to vector<1x1xf32>
    %c0_48 = arith.constant 0 : index
    %c0_49 = arith.constant 0 : index
    %c0_50 = arith.constant 0 : index
    %146 = vector.load %arg2[%c0_48, %c0_49, %c0_50] : memref<4x72x4xf32, #tpu.memory_space<vmem>>, vector<1x72x4xf32>
    %147 = vector.shape_cast %146 : vector<1x72x4xf32> to vector<72x4xf32>
    %148 = vector.broadcast %145 : vector<1x1xf32> to vector<72x4xf32>
    %149 = arith.mulf %148, %147 : vector<72x4xf32>
    %150 = vector.extract_strided_slice %144 {offsets = [1, 0], sizes = [1, 1], strides = [1, 1]} : vector<4x1xf32> to vector<1x1xf32>
    %c1_51 = arith.constant 1 : index
    %c0_52 = arith.constant 0 : index
    %c0_53 = arith.constant 0 : index
    %151 = vector.load %arg2[%c1_51, %c0_52, %c0_53] : memref<4x72x4xf32, #tpu.memory_space<vmem>>, vector<1x72x4xf32>
    %152 = vector.shape_cast %151 : vector<1x72x4xf32> to vector<72x4xf32>
    %153 = vector.broadcast %150 : vector<1x1xf32> to vector<72x4xf32>
    %154 = arith.mulf %153, %152 : vector<72x4xf32>
    %155 = arith.addf %149, %154 : vector<72x4xf32>
    %156 = vector.extract_strided_slice %144 {offsets = [2, 0], sizes = [1, 1], strides = [1, 1]} : vector<4x1xf32> to vector<1x1xf32>
    %c2_54 = arith.constant 2 : index
    %c0_55 = arith.constant 0 : index
    %c0_56 = arith.constant 0 : index
    %157 = vector.load %arg2[%c2_54, %c0_55, %c0_56] : memref<4x72x4xf32, #tpu.memory_space<vmem>>, vector<1x72x4xf32>
    %158 = vector.shape_cast %157 : vector<1x72x4xf32> to vector<72x4xf32>
    %159 = vector.broadcast %156 : vector<1x1xf32> to vector<72x4xf32>
    %160 = arith.mulf %159, %158 : vector<72x4xf32>
    %161 = arith.addf %155, %160 : vector<72x4xf32>
    %162 = vector.extract_strided_slice %144 {offsets = [3, 0], sizes = [1, 1], strides = [1, 1]} : vector<4x1xf32> to vector<1x1xf32>
    %c3_57 = arith.constant 3 : index
    %c0_58 = arith.constant 0 : index
    %c0_59 = arith.constant 0 : index
    %163 = vector.load %arg2[%c3_57, %c0_58, %c0_59] : memref<4x72x4xf32, #tpu.memory_space<vmem>>, vector<1x72x4xf32>
    %164 = vector.shape_cast %163 : vector<1x72x4xf32> to vector<72x4xf32>
    %165 = vector.broadcast %162 : vector<1x1xf32> to vector<72x4xf32>
    %166 = arith.mulf %165, %164 : vector<72x4xf32>
    %167 = arith.addf %161, %166 : vector<72x4xf32>
    %cst_60 = arith.constant dense<0.000000e+00> : vector<72x256xf32>
    %168 = tpu.matmul %167, %126, %cst_60 {dimension_numbers = #tpu.dot_dimension_numbers<[1], [0], [0], [1], [0, 0, 1, 1], [], []>} : vector<72x4xf32>, vector<4x256xf32>, vector<72x256xf32> -> vector<72x256xf32>
    %169 = vector.extract_strided_slice %168 {offsets = [0, 0], sizes = [8, 256], strides = [1, 1]} : vector<72x256xf32> to vector<8x256xf32>
    %c17_i32_61 = arith.constant 17 : i32
    %170 = tpu.dynamic_rotate %169 by %c17_i32_61 dim 1 : vector<8x256xf32>, i32 -> vector<8x256xf32>
    %c0_62 = arith.constant 0 : index
    %c0_63 = arith.constant 0 : index
    %171 = vector.load %arg3[%c0_62, %c0_63] : memref<72x256xf32, #tpu.memory_space<vmem>>, vector<8x256xf32>
    %172 = arith.mulf %171, %170 : vector<8x256xf32>
    %173 = vector.extract_strided_slice %168 {offsets = [8, 0], sizes = [8, 256], strides = [1, 1]} : vector<72x256xf32> to vector<8x256xf32>
    %c16_i32_64 = arith.constant 16 : i32
    %174 = tpu.dynamic_rotate %173 by %c16_i32_64 dim 1 : vector<8x256xf32>, i32 -> vector<8x256xf32>
    %c8_65 = arith.constant 8 : index
    %c0_66 = arith.constant 0 : index
    %175 = vector.load %arg3[%c8_65, %c0_66] : memref<72x256xf32, #tpu.memory_space<vmem>>, vector<8x256xf32>
    %176 = arith.mulf %175, %174 : vector<8x256xf32>
    %177 = arith.addf %172, %176 : vector<8x256xf32>
    %178 = vector.extract_strided_slice %168 {offsets = [16, 0], sizes = [8, 256], strides = [1, 1]} : vector<72x256xf32> to vector<8x256xf32>
    %c15_i32_67 = arith.constant 15 : i32
    %179 = tpu.dynamic_rotate %178 by %c15_i32_67 dim 1 : vector<8x256xf32>, i32 -> vector<8x256xf32>
    %c16_68 = arith.constant 16 : index
    %c0_69 = arith.constant 0 : index
    %180 = vector.load %arg3[%c16_68, %c0_69] : memref<72x256xf32, #tpu.memory_space<vmem>>, vector<8x256xf32>
    %181 = arith.mulf %180, %179 : vector<8x256xf32>
    %182 = arith.addf %177, %181 : vector<8x256xf32>
    %183 = vector.extract_strided_slice %168 {offsets = [24, 0], sizes = [8, 256], strides = [1, 1]} : vector<72x256xf32> to vector<8x256xf32>
    %c1_i32_70 = arith.constant 1 : i32
    %184 = tpu.dynamic_rotate %183 by %c1_i32_70 dim 1 : vector<8x256xf32>, i32 -> vector<8x256xf32>
    %c24_71 = arith.constant 24 : index
    %c0_72 = arith.constant 0 : index
    %185 = vector.load %arg3[%c24_71, %c0_72] : memref<72x256xf32, #tpu.memory_space<vmem>>, vector<8x256xf32>
    %186 = arith.mulf %185, %184 : vector<8x256xf32>
    %187 = arith.addf %182, %186 : vector<8x256xf32>
    %188 = vector.extract_strided_slice %168 {offsets = [32, 0], sizes = [8, 256], strides = [1, 1]} : vector<72x256xf32> to vector<8x256xf32>
    %c32_73 = arith.constant 32 : index
    %c0_74 = arith.constant 0 : index
    %189 = vector.load %arg3[%c32_73, %c0_74] : memref<72x256xf32, #tpu.memory_space<vmem>>, vector<8x256xf32>
    %190 = arith.mulf %189, %188 : vector<8x256xf32>
    %191 = arith.addf %187, %190 : vector<8x256xf32>
    %192 = vector.extract_strided_slice %168 {offsets = [40, 0], sizes = [8, 256], strides = [1, 1]} : vector<72x256xf32> to vector<8x256xf32>
    %c255_i32_75 = arith.constant 255 : i32
    %193 = tpu.dynamic_rotate %192 by %c255_i32_75 dim 1 : vector<8x256xf32>, i32 -> vector<8x256xf32>
    %c40_76 = arith.constant 40 : index
    %c0_77 = arith.constant 0 : index
    %194 = vector.load %arg3[%c40_76, %c0_77] : memref<72x256xf32, #tpu.memory_space<vmem>>, vector<8x256xf32>
    %195 = arith.mulf %194, %193 : vector<8x256xf32>
    %196 = arith.addf %191, %195 : vector<8x256xf32>
    %197 = vector.extract_strided_slice %168 {offsets = [48, 0], sizes = [8, 256], strides = [1, 1]} : vector<72x256xf32> to vector<8x256xf32>
    %c241_i32_78 = arith.constant 241 : i32
    %198 = tpu.dynamic_rotate %197 by %c241_i32_78 dim 1 : vector<8x256xf32>, i32 -> vector<8x256xf32>
    %c48_79 = arith.constant 48 : index
    %c0_80 = arith.constant 0 : index
    %199 = vector.load %arg3[%c48_79, %c0_80] : memref<72x256xf32, #tpu.memory_space<vmem>>, vector<8x256xf32>
    %200 = arith.mulf %199, %198 : vector<8x256xf32>
    %201 = arith.addf %196, %200 : vector<8x256xf32>
    %202 = vector.extract_strided_slice %168 {offsets = [56, 0], sizes = [8, 256], strides = [1, 1]} : vector<72x256xf32> to vector<8x256xf32>
    %c240_i32_81 = arith.constant 240 : i32
    %203 = tpu.dynamic_rotate %202 by %c240_i32_81 dim 1 : vector<8x256xf32>, i32 -> vector<8x256xf32>
    %c56_82 = arith.constant 56 : index
    %c0_83 = arith.constant 0 : index
    %204 = vector.load %arg3[%c56_82, %c0_83] : memref<72x256xf32, #tpu.memory_space<vmem>>, vector<8x256xf32>
    %205 = arith.mulf %204, %203 : vector<8x256xf32>
    %206 = arith.addf %201, %205 : vector<8x256xf32>
    %207 = vector.extract_strided_slice %168 {offsets = [64, 0], sizes = [8, 256], strides = [1, 1]} : vector<72x256xf32> to vector<8x256xf32>
    %c239_i32_84 = arith.constant 239 : i32
    %208 = tpu.dynamic_rotate %207 by %c239_i32_84 dim 1 : vector<8x256xf32>, i32 -> vector<8x256xf32>
    %c64_85 = arith.constant 64 : index
    %c0_86 = arith.constant 0 : index
    %209 = vector.load %arg3[%c64_85, %c0_86] : memref<72x256xf32, #tpu.memory_space<vmem>>, vector<8x256xf32>
    %210 = arith.mulf %209, %208 : vector<8x256xf32>
    %211 = arith.addf %206, %210 : vector<8x256xf32>
    %cst_87 = arith.constant dense<0.000000e+00> : vector<8xf32>
    %212 = vector.multi_reduction <add>, %211, %cst_87 [1] : vector<8x256xf32> to vector<8xf32>
    %213 = vector.shape_cast %212 : vector<8xf32> to vector<8x1xf32>
    %cst_88 = arith.constant 2.560000e+02 : f32
    %214 = vector.broadcast %cst_88 : f32 to vector<8x1xf32>
    %215 = arith.divf %213, %214 : vector<8x1xf32>
    %216 = vector.broadcast %215 : vector<8x1xf32> to vector<8x256xf32>
    %217 = arith.subf %211, %216 : vector<8x256xf32>
    %218 = vector.broadcast %215 : vector<8x1xf32> to vector<8x256xf32>
    %219 = arith.subf %211, %218 : vector<8x256xf32>
    %220 = arith.mulf %217, %219 : vector<8x256xf32>
    %cst_89 = arith.constant dense<0.000000e+00> : vector<8xf32>
    %221 = vector.multi_reduction <add>, %220, %cst_89 [1] : vector<8x256xf32> to vector<8xf32>
    %222 = vector.shape_cast %221 : vector<8xf32> to vector<8x1xf32>
    %cst_90 = arith.constant 2.560000e+02 : f32
    %223 = vector.broadcast %cst_90 : f32 to vector<8x1xf32>
    %224 = arith.divf %222, %223 : vector<8x1xf32>
    %225 = vector.broadcast %215 : vector<8x1xf32> to vector<8x256xf32>
    %226 = arith.subf %211, %225 : vector<8x256xf32>
    %cst_91 = arith.constant 9.99999974E-6 : f32
    %227 = vector.broadcast %cst_91 : f32 to vector<8x1xf32>
    %228 = arith.addf %224, %227 : vector<8x1xf32>
    %229 = math.rsqrt %228 : vector<8x1xf32>
    %230 = vector.broadcast %229 : vector<8x1xf32> to vector<8x256xf32>
    %231 = arith.mulf %226, %230 : vector<8x256xf32>
    %232 = vector.broadcast %4 : vector<8x1xf32> to vector<8x256xf32>
    %233 = arith.mulf %231, %232 : vector<8x256xf32>
    %234 = vector.broadcast %5 : vector<8x1xf32> to vector<8x256xf32>
    %235 = arith.addf %233, %234 : vector<8x256xf32>
    %cst_92 = arith.constant 0.000000e+00 : f32
    %236 = vector.broadcast %cst_92 : f32 to vector<8x256xf32>
    %237 = arith.cmpf ogt, %235, %236 : vector<8x256xf32>
    %cst_93 = arith.constant 0.00999999977 : f32
    %238 = vector.broadcast %cst_93 : f32 to vector<8x256xf32>
    %239 = arith.mulf %238, %235 : vector<8x256xf32>
    %240 = arith.select %237, %235, %239 : vector<8x256xi1>, vector<8x256xf32>
    %c1_94 = arith.constant 1 : index
    %c0_95 = arith.constant 0 : index
    %c0_96 = arith.constant 0 : index
    %241 = vector.load %arg5[%c1_94, %c0_95, %c0_96] : memref<2x8x256xf32, #tpu.memory_space<vmem>>, vector<1x8x256xf32>
    %242 = vector.shape_cast %241 : vector<1x8x256xf32> to vector<8x256xf32>
    %243 = vector.shape_cast %240 : vector<8x256xf32> to vector<1x8x256xf32>
    tpu.vector_store %arg5[%c1_94, %c0_95, %c0_96], %243 {strides = array<i32>} : memref<2x8x256xf32, #tpu.memory_space<vmem>>, vector<1x8x256xf32>,
    return
  }
  func.func @transform_0(%arg0: i32) -> (i32, i32, i32) {
    %c0_i32 = arith.constant 0 : i32
    %c0_i32_0 = arith.constant 0 : i32
    %c0_i32_1 = arith.constant 0 : i32
    return %arg0, %c0_i32, %c0_i32_0 : i32, i32, i32
  }
  func.func @transform_1(%arg0: i32) -> (i32, i32, i32) {
    %c0_i32 = arith.constant 0 : i32
    %c0_i32_0 = arith.constant 0 : i32
    %c0_i32_1 = arith.constant 0 : i32
    %c0_i32_2 = arith.constant 0 : i32
    return %c0_i32, %c0_i32_0, %c0_i32_1 : i32, i32, i32
  }
  func.func @transform_2(%arg0: i32) -> (i32, i32) {
    %c0_i32 = arith.constant 0 : i32
    %c0_i32_0 = arith.constant 0 : i32
    %c0_i32_1 = arith.constant 0 : i32
    return %c0_i32, %c0_i32_0 : i32, i32
  }
  func.func @transform_3(%arg0: i32) -> (i32, i32) {
    %c0_i32 = arith.constant 0 : i32
    %c0_i32_0 = arith.constant 0 : i32
    %c0_i32_1 = arith.constant 0 : i32
    return %c0_i32, %c0_i32_0 : i32, i32
  }
  func.func @transform_4(%arg0: i32) -> (i32, i32, i32) {
    %c0_i32 = arith.constant 0 : i32
    %c0_i32_0 = arith.constant 0 : i32
    %c0_i32_1 = arith.constant 0 : i32
    return %arg0, %c0_i32, %c0_i32_0 : i32, i32, i32
  }
}

</mosaic_0001>

<bundles_post_ra>
// kernel: tpu_custom_call.1
= control target key start
LH: loop header
LB: loop body
LE: loop exit
PB: predicated region body
PF: predicated region fallthrough
CT: control target
= control target key end

     0   :  { %s1651_s0 = inlined_call_operand.vmem [shape: f32[2,4,256], index: 0, kind: input, shape index: {}]   ;;  %s1652_s1 = inlined_call_operand.vmem [shape: f32[4,72,4], index: 1, kind: input, shape index: {}]   ;;  %s1653_s2 = inlined_call_operand.vmem [shape: f32[72,256], index: 2, kind: input, shape index: {}]   ;;  %s1654_s3 = inlined_call_operand.vmem [shape: f32[8,8], index: 3, kind: input, shape index: {}]   ;;  %s1655_s4 = inlined_call_operand.hbm [shape: f32[2,8,256], index: 4, kind: output, shape index: {}]  }
   0x1   :  { %v19_v0 = vld [vmem:[%s1651_s0] sm:$0xff] }
   0x2   :  { %21 = vst [vmem:[#allocation1] ss:$2 sm:$0xff] %v19_v0 }
   0x3   :  { %9 = vsyncpa [#allocation3], 0  ;;  %vm26_vm0 = vcmask 1043456   ;;  %v958_v6 = vld [vmem:[%s1651_s0 + $0x8] sm:$0xff]  ;;  %v1078_v14 = vmov 256.0   ;;  %v18_v22 = vld [vmem:[%s1654_s3] sm:$0xff] }
   0x4   :  { %1041 = vrcp.f32 %v1078_v14  ;;  %vm41_vm2 = vcmask 11264   ;;  %s1079_s20 = smov 2   ;;  %s1080_s21 = smov 126   ;;  %vm195_vm3 = vcmask 31744  }
   0x5   :  { %s1081_s22 = smov 124   ;;  %s1086_s25 = smov 127  }
   0x6   :  { %s1087_s26 = smov 113   ;;  %s899_s16 = sshll.u32 %s1655_s4, 4  ;;  %s900_s16 = int_to_ptr.hbm [resolvable:$true] %s899_s16 }
   0x7   :  { %s1093_s17 = smov 256  }
   0x9   :  { %v22_v1 = vld.sshfl [vmem:[#allocation1] sm:$0xff pattern:$0x75316420]  ;;  %v23_v2 = vld.sshfl [vmem:[#allocation1 + $0x8] sm:$0xff pattern:$0x75316420] }
   0xa   :  { %v27_v3 = vsel %vm26_vm0, %v22_v1, 0.0  ;;  %v28_v4 = vsel %vm26_vm0, %v23_v2, 0.0  ;;  %192 = vst [vmem:[#allocation1] ss:$2 sm:$0xff] %v19_v0  ;;  %v1042_v15 = vpop.eup %1041 }
   0xb   :  { %v29_v5 = vadd.f32 %v28_v4, %v27_v3  ;;  %v33_v16 = vmul.f32 256.0, %v1042_v15  ;;  %vm37_vm1 = vweird.f32 %v1042_v15 }
   0xd   :  { %30 = vadd.xlane.f32.xlu0 %v29_v5  ;;  %v34_v17 = vsub.f32 1.0, %v33_v16  ;;  %v911_v16 = vld [vmem:[%s1652_s1 + $0x48] sm:$0xff] }
   0xf   :  { %v35_v18 = vmul.f32 %v1042_v15, %v34_v17 }
  0x11   :  { %v193_v7 = vld.sshfl [vmem:[#allocation1] sm:$0xff pattern:$0x75316420]  ;;  %v194_v8 = vld.sshfl [vmem:[#allocation1 + $0x8] sm:$0xff pattern:$0x75316420]  ;;  %v36_v19 = vadd.f32 %v1042_v15, %v35_v18 }
  0x12   :  { %474 = vst [vmem:[#allocation1] ss:$2 sm:$0xff] %v958_v6  ;;  %938 = vmatpush.msk.msra.mxu0 %vm26_vm0, %v193_v7  ;;  %948 = vmatpush.msk.msra.mxu1 %vm26_vm0, %v194_v8  ;;  %v1157_v18 = vld [vmem:[%s1652_s1 + $0x90] sm:$0xff] }
  0x13   :  { %v1131_v20 = vsel %vm37_vm1, %v1042_v15, %v36_v19  ;;  %v66_v15 = vld [vmem:[%s1652_s1] sm:$0xff]  ;;  %v1162_v19 = vld [vmem:[%s1652_s1 + $0x50] sm:$0xff] }
  0x19   :  { %v475_v9 = vld.sshfl [vmem:[#allocation1] sm:$0xff pattern:$0x75316420]  ;;  %v476_v10 = vld.sshfl [vmem:[#allocation1 + $0x8] sm:$0xff pattern:$0x75316420] }
  0x1a   :  { %v479_v11 = vsel %vm26_vm0, %v475_v9, 0.0  ;;  %v480_v12 = vsel %vm26_vm0, %v476_v10, 0.0  ;;  %633 = vst [vmem:[#allocation1] ss:$2 sm:$0xff] %v958_v6 }
  0x1b   :  { %v481_v13 = vadd.f32 %v480_v12, %v479_v11 }
  0x1d   :  { %482 = vadd.xlane.f32.xlu0 %v481_v13 }
  0x21   :  { %v634_v12 = vld.sshfl [vmem:[#allocation1] sm:$0xff pattern:$0x75316420]  ;;  %v635_v13 = vld.sshfl [vmem:[#allocation1 + $0x8] sm:$0xff pattern:$0x75316420] }
  0x22   :  { %986 = vmatpush.msk.msra.mxu2 %vm26_vm0, %v634_v12  ;;  %996 = vmatpush.msk.msra.mxu3 %vm26_vm0, %v635_v13  ;;  %v1286_v13 = vld [vmem:[%s1652_s1 + $0x68] sm:$0xff] }
  0x80   :  { %v31_v21 = vpop.xlane.xlu0 %30 }
  0x81   :  { %v39_v23 = vmul.f32 %v1131_v20, %v31_v21 }
  0x83   :  { %v40_v24 = vmul.f32 %v39_v23, %v18_v22 }
  0x85   :  { %v42_v25 = vsel %vm41_vm2, %v40_v24, 0.0 }
  0x86   :  { %v43_v26 = vrot.slane %v42_v25, 4 }
  0x88   :  { %v44_v27 = vadd.f32 %v43_v26, %v42_v25  ;;  %v1173_v25 = vld [vmem:[%s1652_s1 + $0xd8] sm:$0xff]  ;;  %v1178_v26 = vld [vmem:[%s1652_s1 + $0x8] sm:$0xff] }
  0x8a   :  { %v45_v28 = vrot.slane %v44_v27, 2 }
  0x8c   :  { %v46_v29 = vadd.f32 %v45_v28, %v44_v27 }
  0x8e   :  { %v47_v30 = vrot.slane %v46_v29, 1 }
  0x90   :  { %v483_v31 = vpop.xlane.xlu0 %482  ;;  %v48_v32 = vadd.f32 %v47_v30, %v46_v29 }
  0x91   :  { %v484_v33 = vmul.f32 %v483_v31, %v1131_v20 }
  0x92   :  { %v49_v34 = vmax.f32 %v48_v32, 0.0 }
  0x93   :  { %v485_v35 = vmul.f32 %v484_v33, %v18_v22  ;;  %v1191_v33 = vld [vmem:[%s1652_s1 + $0x98] sm:$0xff] }
  0x94   :  { %51 = vrot.lane.b32.xlu1 %v49_v34, %s1079_s20 }
  0x95   :  { %v486_v36 = vsel %vm41_vm2, %v485_v35, 0.0 }
  0x96   :  { %v487_v37 = vrot.slane %v486_v36, 4 }
  0x98   :  { %v488_v38 = vadd.f32 %v487_v37, %v486_v36  ;;  %v1196_v36 = vld [vmem:[%s1652_s1 + $0x58] sm:$0xff] }
  0x9a   :  { %v489_v39 = vrot.slane %v488_v38, 2 }
  0x9c   :  { %v490_v40 = vadd.f32 %v489_v39, %v488_v38  ;;  %v1205_v38 = vld [vmem:[%s1652_s1 + $0xe0] sm:$0xff]  ;;  %v1210_v39 = vld [vmem:[%s1652_s1 + $0x10] sm:$0xff] }
  0x9e   :  { %v491_v41 = vrot.slane %v490_v40, 1 }
  0xa0   :  { %v492_v42 = vadd.f32 %v491_v41, %v490_v40 }
  0xa2   :  { %v493_v43 = vmax.f32 %v492_v42, 0.0  ;;  %v74_v42 = vld [vmem:[%s1652_s1 + $0x40] sm:$0xff] }
  0xa4   :  { %495 = vrot.lane.b32.xlu1 %v493_v43, %s1079_s20  ;;  %v919_v43 = vld [vmem:[%s1652_s1 + $0x88] sm:$0xff] }
 0x106   :  { %v52_v44 = vpop.permute.xlu1 %51 }
 0x107   :  { %v54_v45 = vmul.f32 %v52_v44, %v18_v22 }
 0x109   :  { %56 = vrot.lane.b32.xlu2 %v54_v45, %s1080_s21 }
 0x116   :  { %v496_v46 = vpop.permute.xlu1 %495 }
 0x117   :  { %v498_v47 = vmul.f32 %v496_v46, %v18_v22  ;;  %v1227_v46 = vld [vmem:[%s1652_s1 + $0xa0] sm:$0xff] }
 0x119   :  { %500 = vrot.lane.b32.xlu2 %v498_v47, %s1080_s21 }
 0x163   :  { %v57_v48 = vpop.permute.xlu2 %56 }
 0x164   :  { %v59_v49 = vsel %vm41_vm2, %v57_v48, 0.0 }
 0x165   :  { %60 = vadd.xlane.f32.xlu0 %v59_v49 }
 0x173   :  { %v501_v50 = vpop.permute.xlu2 %500 }
 0x174   :  { %v503_v51 = vsel %vm41_vm2, %v501_v50, 0.0 }
 0x175   :  { %504 = vadd.xlane.f32.xlu1 %v503_v51 }
 0x1d8   :  { %v61_v52 = vpop.xlane.xlu0 %60 }
 0x1d9   :  { %v62_v53 = vadd.f32 %v61_v52, %v18_v22 }
 0x1db   :  { %v63_v54 = vmul.f32 0.033333335, %v62_v53  ;;  %v1238_v53 = vld [vmem:[%s1652_s1 + $0x60] sm:$0xff] }
 0x1dd   :  { %v64_v55 = vmul.f32 1.442695, %v63_v54 }
 0x1df   :  { %1043 = vpow2.f32 %v64_v55 }
 0x1e5   :  { %v1044_v56 = vpop.eup %1043 }
 0x1e6   :  { %76 = vrot.lane.b32.xlu2 %v1044_v56, %s1081_s22  ;;  %v100_v57 = vrot.slane %v1044_v56, 1  ;;  %v134_v61 = vrot.slane %v1044_v56, 2  ;;  %v168_v63 = vrot.slane %v1044_v56, 3 }
 0x1e8   :  { %101 = vrot.lane.b32.xlu0 %v100_v57, %s1081_s22  ;;  %v505_v58 = vpop.xlane.xlu1 %504  ;;  %v928_v57 = vld [vmem:[%s1652_s1 + $0xd0] sm:$0xff] }
 0x1e9   :  { %v506_v59 = vadd.f32 %v505_v58, %v18_v22  ;;  %v1251_v58 = vld [vmem:[%s1652_s1 + $0xe8] sm:$0xff] }
 0x1eb   :  { %v507_v60 = vmul.f32 0.033333335, %v506_v59  ;;  %v1256_v59 = vld [vmem:[%s1652_s1 + $0x18] sm:$0xff] }
 0x1ed   :  { %v508_v62 = vmul.f32 1.442695, %v507_v60 }
 0x1ee   :  { %135 = vrot.lane.b32.xlu2 %v134_v61, %s1081_s22 }
 0x1ef   :  { %1045 = vpow2.f32 %v508_v62 }
 0x1f5   :  { %v1046_v0 = vpop.eup %1045 }
 0x1f6   :  { %169 = vrot.lane.b32.xlu2 %v168_v63, %s1081_s22  ;;  %v543_v1 = vrot.slane %v1046_v0, 1  ;;  %v609_v2 = vrot.slane %v1046_v0, 3  ;;  %v576_v3 = vrot.slane %v1046_v0, 2  ;;  %v937_v63 = vld [vmem:[%s1652_s1 + $0x118] sm:$0xff] }
 0x1f8   :  { %544 = vrot.lane.b32.xlu0 %v543_v1, %s1081_s22 }
 0x1fe   :  { %520 = vrot.lane.b32.xlu2 %v1046_v0, %s1081_s22 }
 0x200   :  { %610 = vrot.lane.b32.xlu0 %v609_v2, %s1081_s22 }
 0x206   :  { %577 = vrot.lane.b32.xlu2 %v576_v3, %s1081_s22  ;;  %s1083_s22 = smov 16  }
 0x240   :  { %v77_v4 = vpop.permute.xlu2 %76 }
 0x241   :  { %1006 = vpush %v77_v4 }
 0x248   :  { %v136_v5 = vpop.permute.xlu2 %135 }
 0x250   :  { %v170_v6 = vpop.permute.xlu2 %169 }
 0x258   :  { %v521_v8 = vpop.permute.xlu2 %520 }
 0x25a   :  { %v102_v7 = vpop.permute.xlu0 %101 }
 0x25b   :  { %1008 = vpush %v102_v7 }
 0x25c   :  { %1010 = vpush %v136_v5  ;;  %v1274_v5 = vld [vmem:[%s1652_s1 + $0xa8] sm:$0xff] }
 0x25d   :  { %1012 = vpush %v170_v6 }
 0x25e   :  { %1014 = vpush %v521_v8 }
 0x260   :  { %v578_v10 = vpop.permute.xlu2 %577 }
 0x26a   :  { %v545_v9 = vpop.permute.xlu0 %544 }
 0x26b   :  { %1016 = vpush %v545_v9 }
 0x26c   :  { %1018 = vpush %v578_v10 }
 0x272   :  { %v611_v11 = vpop.permute.xlu0 %610  ;;  %s1007_s23 = spop %1006 }
 0x273   :  { %1020 = vpush %v611_v11  ;;  %v1144_v14 = vstv %s1007_s23  ;;  %s1084_s23 = smov 15  }
 0x274   :  { %v81_v22 = vmul.f32 %v1144_v14, %v66_v15  ;;  %v82_v32 = vmul.f32 %v1144_v14, %v1178_v26  ;;  %v83_v45 = vmul.f32 %v1144_v14, %v1210_v39  ;;  %v89_v47 = vmul.f32 %v1144_v14, %v74_v42 }
 0x275   :  { %v84_v4 = vmul.f32 %v1144_v14, %v1256_v59 }
 0x28c   :  { %s1009_s28 = spop %1008 }
 0x28d   :  { %v1152_v17 = vstv %s1009_s28  ;;  %s1011_s29 = spop %1010  ;;  %s1089_s28 = smov 111  }
 0x28e   :  { %v1164_v21 = vstv %s1011_s29  ;;  %s1013_s8 = spop %1012  ;;  %v106_v23 = vmul.f32 %v911_v16, %v1152_v17  ;;  %v107_v29 = vmul.f32 %v1162_v19, %v1152_v17  ;;  %v108_v41 = vmul.f32 %v1196_v36, %v1152_v17 }
 0x28f   :  { %v1168_v24 = vstv %s1013_s8  ;;  %v140_v28 = vmul.f32 %v1157_v18, %v1164_v21  ;;  %v141_v37 = vmul.f32 %v1191_v33, %v1164_v21  ;;  %s1015_s24 = spop %1014  ;;  %v114_v48 = vmul.f32 %v919_v43, %v1152_v17 }
 0x290   :  { %v115_v27 = vadd.f32 %v106_v23, %v81_v22  ;;  %v174_v31 = vmul.f32 %v1173_v25, %v1168_v24  ;;  %v116_v35 = vadd.f32 %v107_v29, %v82_v32  ;;  %v175_v44 = vmul.f32 %v1205_v38, %v1168_v24  ;;  %v1299_v23 = vld [vmem:[%s1652_s1 + $0xf0] sm:$0xff] }
 0x291   :  { %v117_v50 = vadd.f32 %v108_v41, %v83_v45  ;;  %v1231_v51 = vstv %s1015_s24  ;;  %v123_v54 = vadd.f32 %v114_v48, %v89_v47  ;;  %v142_v55 = vmul.f32 %v1227_v46, %v1164_v21  ;;  %v1330_v45 = vld [vmem:[%s1652_s1 + $0x70] sm:$0xff]  ;;  %s1085_s24 = smov 1  }
 0x292   :  { %v149_v30 = vadd.f32 %v140_v28, %v115_v27  ;;  %v150_v40 = vadd.f32 %v141_v37, %v116_v35  ;;  %v525_v61 = vmul.f32 %v1231_v51, %v66_v15  ;;  %v109_v62 = vmul.f32 %v1238_v53, %v1152_v17  ;;  %v1304_v27 = vld [vmem:[%s1652_s1 + $0x20] sm:$0xff] }
 0x293   :  { %v151_v60 = vadd.f32 %v142_v55, %v117_v50  ;;  %v148_v1 = vmul.f32 %v928_v57, %v1164_v21  ;;  %v176_v2 = vmul.f32 %v1251_v58, %v1168_v24  ;;  %v182_v7 = vmul.f32 %v937_v63, %v1168_v24  ;;  %v1346_v50 = vld [vmem:[%s1652_s1 + $0x28] sm:$0xff] }
 0x294   :  { %v183_v34 = vadd.f32 %v174_v31, %v149_v30  ;;  %v184_v49 = vadd.f32 %v175_v44, %v150_v40  ;;  %v118_v10 = vadd.f32 %v109_v62, %v84_v4  ;;  %v143_v12 = vmul.f32 %v1274_v5, %v1164_v21 }
 0x295   :  { %v157_v6 = vadd.f32 %v148_v1, %v123_v54  ;;  %v185_v8 = vadd.f32 %v176_v2, %v151_v60  ;;  %v526_v30 = vmul.f32 %v1231_v51, %v1178_v26  ;;  %v85_v32 = vmul.f32 %v1144_v14, %v1304_v27  ;;  %v1362_v1 = vld [vmem:[%s1652_s1 + $0xb8] sm:$0xff] }
 0x296   :  { %939 = vmatmul.msk.f32.vlgmr.msra.gmra.mxu0 %vm195_vm3, %v183_v34  ;;  %949 = vmatmul.msk.f32.vlgmr.msra.gmra.mxu1 %vm195_vm3, %v183_v34  ;;  %v152_v29 = vadd.f32 %v143_v12, %v118_v10  ;;  %v1319_v34 = vld [vmem:[%s1652_s1 + $0xb0] sm:$0xff]  ;;  %v533_v26 = vmul.f32 %v1231_v51, %v74_v42  ;;  %v111_v60 = vmul.f32 %v1330_v45, %v1152_v17 }
 0x297   :  { %v1288_v15 = vadd.f32 %v182_v7, %v157_v6  ;;  %v1371_v6 = vld [vmem:[%s1652_s1 + $0x78] sm:$0xff] }
 0x29c   :  { %s1017_s27 = spop %1016 }
 0x29d   :  { %v1233_v52 = vstv %s1017_s27  ;;  %s1019_s30 = spop %1018  ;;  %s1088_s27 = smov 112  }
 0x29e   :  { %940 = vmatmul.msk.f32.gmra.mxu0 %vm195_vm3, %v184_v49  ;;  %950 = vmatmul.msk.f32.gmra.mxu1 %vm195_vm3, %v184_v49  ;;  %v549_v56 = vmul.f32 %v911_v16, %v1233_v52  ;;  %v1264_v0 = vstv %s1019_s30  ;;  %v550_v22 = vmul.f32 %v1162_v19, %v1233_v52  ;;  %v177_v19 = vmul.f32 %v1299_v23, %v1168_v24  ;;  %v933_v49 = vld [vmem:[%s1652_s1 + $0xf8] sm:$0xff] }
 0x29f   :  { %v582_v9 = vmul.f32 %v1157_v18, %v1264_v0  ;;  %v557_v35 = vmul.f32 %v919_v43, %v1233_v52  ;;  %v583_v40 = vmul.f32 %v1191_v33, %v1264_v0  ;;  %v590_v48 = vmul.f32 %v928_v57, %v1264_v0 }
 0x2a0   :  { %v558_v3 = vadd.f32 %v549_v56, %v525_v61  ;;  %v559_v31 = vadd.f32 %v550_v22, %v526_v30  ;;  %v186_v37 = vadd.f32 %v177_v19, %v152_v29  ;;  %v144_v33 = vmul.f32 %v1319_v34, %v1164_v21  ;;  %v926_v29 = vld [vmem:[%s1652_s1 + $0xc0] sm:$0xff] }
 0x2a1   :  { %v566_v47 = vadd.f32 %v557_v35, %v533_v26  ;;  %v527_v57 = vmul.f32 %v1231_v51, %v1210_v39  ;;  %v584_v2 = vmul.f32 %v1227_v46, %v1264_v0  ;;  %v552_v46 = vmul.f32 %v1238_v53, %v1233_v52 }
 0x2a2   :  { %v591_v16 = vadd.f32 %v582_v9, %v558_v3  ;;  %v592_v43 = vadd.f32 %v583_v40, %v559_v31  ;;  %v72_v9 = vld [vmem:[%s1652_s1 + $0x30] sm:$0xff]  ;;  %v918_v31 = vld [vmem:[%s1652_s1 + $0x80] sm:$0xff]  ;;  %v146_v26 = vmul.f32 %v926_v29, %v1164_v21  ;;  %v553_v35 = vmul.f32 %v1286_v13, %v1233_v52 }
 0x2a3   :  { %v599_v54 = vadd.f32 %v590_v48, %v566_v47 }
 0x2a4   :  { %s1021_s15 = spop %1020 }
 0x2a5   :  { %v1279_v11 = vstv %s1021_s15 }
 0x2a6   :  { %941 = vmatmul.msk.f32.gmra.mxu0 %vm195_vm3, %v185_v8  ;;  %951 = vmatmul.msk.f32.gmra.mxu1 %vm195_vm3, %v185_v8  ;;  %v615_v18 = vmul.f32 %v1173_v25, %v1279_v11  ;;  %v110_v25 = vmul.f32 %v1286_v13, %v1152_v17  ;;  %v616_v41 = vmul.f32 %v1205_v38, %v1279_v11 }
 0x2a7   :  { %v623_v42 = vmul.f32 %v937_v63, %v1279_v11  ;;  %v551_v38 = vmul.f32 %v1196_v36, %v1233_v52  ;;  %v178_v36 = vmul.f32 %v933_v49, %v1168_v24  ;;  %v86_v63 = vmul.f32 %v1144_v14, %v1346_v50 }
 0x2a8   :  { %v624_v28 = vadd.f32 %v615_v18, %v591_v16  ;;  %v119_v44 = vadd.f32 %v110_v25, %v85_v32  ;;  %v625_v55 = vadd.f32 %v616_v41, %v592_v43  ;;  %v617_v3 = vmul.f32 %v1251_v58, %v1279_v11  ;;  %v934_v58 = vld [vmem:[%s1652_s1 + $0x100] sm:$0xff] }
 0x2a9   :  { %v1352_v61 = vadd.f32 %v623_v42, %v599_v54  ;;  %v560_v62 = vadd.f32 %v551_v38, %v527_v57  ;;  %v120_v4 = vadd.f32 %v111_v60, %v86_v63  ;;  %v145_v8 = vmul.f32 %v1362_v1, %v1164_v21  ;;  %v927_v42 = vld [vmem:[%s1652_s1 + $0xc8] sm:$0xff] }
 0x2aa   :  { %987 = vmatmul.msk.f32.vlgmr.msra.gmra.mxu2 %vm195_vm3, %v624_v28  ;;  %997 = vmatmul.msk.f32.vlgmr.msra.gmra.mxu3 %vm195_vm3, %v624_v28  ;;  %v153_v56 = vadd.f32 %v144_v33, %v119_v44  ;;  %v528_v16 = vmul.f32 %v1231_v51, %v1256_v59  ;;  %v112_v18 = vmul.f32 %v1371_v6, %v1152_v17 }
 0x2ab   :  { %v593_v7 = vadd.f32 %v584_v2, %v560_v62  ;;  %v154_v12 = vadd.f32 %v145_v8, %v120_v4  ;;  %v179_v53 = vmul.f32 %v934_v58, %v1168_v24  ;;  %v87_v28 = vmul.f32 %v1144_v14, %v72_v9 }
 0x2ac   :  { %v187_v39 = vadd.f32 %v178_v36, %v153_v56  ;;  %v561_v22 = vadd.f32 %v552_v46, %v528_v16  ;;  %v585_v59 = vmul.f32 %v1274_v5, %v1264_v0  ;;  %v618_v25 = vmul.f32 %v1299_v23, %v1279_v11  ;;  %v935_v5 = vld [vmem:[%s1652_s1 + $0x108] sm:$0xff]  ;;  %v73_v23 = vld [vmem:[%s1652_s1 + $0x38] sm:$0xff] }
 0x2ad   :  { %v626_v10 = vadd.f32 %v617_v3, %v593_v7  ;;  %v188_v30 = vadd.f32 %v179_v53, %v154_v12  ;;  %v121_v19 = vadd.f32 %v112_v18, %v87_v28  ;;  %v529_v41 = vmul.f32 %v1231_v51, %v1304_v27 }
 0x2ae   :  { %942 = vmatmul.msk.f32.gmra.mxu0 %vm195_vm3, %v186_v37  ;;  %952 = vmatmul.msk.f32.gmra.mxu1 %vm195_vm3, %v186_v37  ;;  %v594_v32 = vadd.f32 %v585_v59, %v561_v22  ;;  %v113_v44 = vmul.f32 %v918_v31, %v1152_v17  ;;  %v180_v13 = vmul.f32 %v935_v5, %v1168_v24 }
 0x2af   :  { %v155_v40 = vadd.f32 %v146_v26, %v121_v19  ;;  %v562_v47 = vadd.f32 %v553_v35, %v529_v41  ;;  %v88_v48 = vmul.f32 %v1144_v14, %v73_v23  ;;  %v586_v33 = vmul.f32 %v1319_v34, %v1264_v0 }
 0x2b0   :  { %v627_v37 = vadd.f32 %v618_v25, %v594_v32  ;;  %v619_v27 = vmul.f32 %v933_v49, %v1279_v11  ;;  %v147_v54 = vmul.f32 %v927_v42, %v1164_v21  ;;  %v554_v14 = vmul.f32 %v1330_v45, %v1233_v52 }
 0x2b1   :  { %v189_v43 = vadd.f32 %v180_v13, %v155_v40  ;;  %v122_v17 = vadd.f32 %v113_v44, %v88_v48  ;;  %v595_v38 = vadd.f32 %v586_v33, %v562_v47  ;;  %v530_v34 = vmul.f32 %v1231_v51, %v1346_v50 }
 0x2b2   :  { %988 = vmatmul.msk.f32.gmra.mxu2 %vm195_vm3, %v625_v55  ;;  %998 = vmatmul.msk.f32.gmra.mxu3 %vm195_vm3, %v625_v55  ;;  %v936_v55 = vld [vmem:[%s1652_s1 + $0x110] sm:$0xff]  ;;  %v587_v45 = vmul.f32 %v1362_v1, %v1264_v0  ;;  %v620_v36 = vmul.f32 %v934_v58, %v1279_v11  ;;  %v555_v50 = vmul.f32 %v1371_v6, %v1233_v52  ;;  %s1082_s1 = smov 17  }
 0x2b3   :  { %v628_v56 = vadd.f32 %v619_v27, %v595_v38  ;;  %v156_v57 = vadd.f32 %v147_v54, %v122_v17  ;;  %v181_v49 = vmul.f32 %v936_v55, %v1168_v24  ;;  %v563_v60 = vadd.f32 %v554_v14, %v530_v34 }
 0x2b4   :  { %v588_v1 = vmul.f32 %v926_v29, %v1264_v0  ;;  %v621_v2 = vmul.f32 %v935_v5, %v1279_v11  ;;  %v556_v4 = vmul.f32 %v918_v31, %v1233_v52  ;;  %v532_v7 = vmul.f32 %v1231_v51, %v73_v23 }
 0x2b5   :  { %v190_v21 = vadd.f32 %v181_v49, %v156_v57  ;;  %v596_v62 = vadd.f32 %v587_v45, %v563_v60  ;;  %v589_v46 = vmul.f32 %v927_v42, %v1264_v0  ;;  %v622_v58 = vmul.f32 %v936_v55, %v1279_v11  ;;  %v1488_v49 = vld [vmem:[%s1653_s2] sm:$0xff]  ;;  %v1494_v60 = vld [vmem:[%s1653_s2 + $0x8] sm:$0xff] }
 0x2b6   :  { %943 = vmatmul.msk.f32.gmra.mxu0 %vm195_vm3, %v187_v39  ;;  %953 = vmatmul.msk.f32.gmra.mxu1 %vm195_vm3, %v187_v39  ;;  %v531_v39 = vmul.f32 %v1231_v51, %v72_v9  ;;  %v565_v8 = vadd.f32 %v556_v4, %v532_v7  ;;  %v319_v55 = vlaneseq }
 0x2b7   :  { %v629_v63 = vadd.f32 %v620_v36, %v596_v62  ;;  %v335_v36 = vld [vmem:[%s1653_s2 + $0x10] sm:$0xff]  ;;  %v336_v62 = vld [vmem:[%s1653_s2 + $0x18] sm:$0xff] }
 0x2b8   :  { %v564_v24 = vadd.f32 %v555_v50, %v531_v39  ;;  %v598_v9 = vadd.f32 %v589_v46, %v565_v8 }
 0x2ba   :  { %989 = vmatmul.msk.f32.gmra.mxu2 %vm195_vm3, %v626_v10  ;;  %999 = vmatmul.msk.f32.gmra.mxu3 %vm195_vm3, %v626_v10  ;;  %v597_v3 = vadd.f32 %v588_v1, %v564_v24  ;;  %v631_v10 = vadd.f32 %v622_v58, %v598_v9 }
 0x2bc   :  { %v630_v6 = vadd.f32 %v621_v2, %v597_v3 }
 0x2be   :  { %944 = vmatmul.msk.f32.gmra.mxu0 %vm195_vm3, %v188_v30  ;;  %954 = vmatmul.msk.f32.gmra.mxu1 %vm195_vm3, %v188_v30 }
 0x2c2   :  { %990 = vmatmul.msk.f32.gmra.mxu2 %vm195_vm3, %v627_v37  ;;  %1000 = vmatmul.msk.f32.gmra.mxu3 %vm195_vm3, %v627_v37 }
 0x2c6   :  { %945 = vmatmul.msk.f32.gmra.mxu0 %vm195_vm3, %v189_v43  ;;  %955 = vmatmul.msk.f32.gmra.mxu1 %vm195_vm3, %v189_v43 }
 0x2ca   :  { %991 = vmatmul.msk.f32.gmra.mxu2 %vm195_vm3, %v628_v56  ;;  %1001 = vmatmul.msk.f32.gmra.mxu3 %vm195_vm3, %v628_v56  ;;  %v1480_v56 = vand.u32 127, %v319_v55 }
 0x2cc   :  { %vm321_vm4 = vcmp.lt.s32.totalorder %v1480_v56, 17  ;;  %vm332_vm5 = vcmp.lt.s32.totalorder %v1480_v56, 16  ;;  %vm345_vm6 = vcmp.lt.s32.totalorder %v1480_v56, 15  ;;  %vm358_vm7 = vcmp.lt.s32.totalorder %v1480_v56, 1 }
 0x2cd   :  { %vm377_vm8 = vcmp.lt.s32.totalorder %v1480_v56, 127  ;;  %vm390_vm9 = vcmp.lt.s32.totalorder %v1480_v56, 113  ;;  %vm403_vm10 = vcmp.lt.s32.totalorder %v1480_v56, 112  ;;  %vm416_vm11 = vcmp.lt.s32.totalorder %v1480_v56, 111  ;;  %v1051_v56 = vld [vmem:[%s1654_s3] sm:$0xff]  ;;  %s1092_s3 = smov [#allocation2]  }
 0x2ce   :  { %946 = vmatmul.msk.f32.gmra.mxu0 %vm195_vm3, %v190_v21  ;;  %956 = vmatmul.msk.f32.gmra.mxu1 %vm195_vm3, %v190_v21  ;;  %s897_s13 = sshll.u32 %s1092_s3, 4  ;;  %s898_s13 = int_to_ptr.vmem [resolvable:$true] %s897_s13 }
 0x2d2   :  { %992 = vmatmul.msk.f32.gmra.mxu2 %vm195_vm3, %v629_v63  ;;  %1002 = vmatmul.msk.f32.gmra.mxu3 %vm195_vm3, %v629_v63 }
 0x2d6   :  { %947 = vmatmul.msk.f32.gmra.mxu0 %vm195_vm3, %v1288_v15  ;;  %957 = vmatmul.msk.f32.gmra.mxu1 %vm195_vm3, %v1288_v15 }
 0x2da   :  { %993 = vmatmul.msk.f32.gmra.mxu2 %vm195_vm3, %v630_v6  ;;  %1003 = vmatmul.msk.f32.gmra.mxu3 %vm195_vm3, %v630_v6 }
 0x2e2   :  { %994 = vmatmul.msk.f32.gmra.mxu2 %vm195_vm3, %v631_v10  ;;  %1004 = vmatmul.msk.f32.gmra.mxu3 %vm195_vm3, %v631_v10  ;;  %v348_v10 = vld [vmem:[%s1653_s2 + $0x20] sm:$0xff] }
 0x2ea   :  { %995 = vmatmul.msk.f32.gmra.mxu2 %vm195_vm3, %v1352_v61  ;;  %1005 = vmatmul.msk.f32.gmra.mxu3 %vm195_vm3, %v1352_v61 }
 0x313   :  { %v244_v51 = vpop.f32.mrf.mxu0  ;;  %v288_v52 = vpop.f32.mrf.mxu1 }
 0x314   :  { %317 = vrot.lane.b32.xlu1 %v288_v52, %s1082_s1  ;;  %315 = vrot.lane.b32.xlu2 %v244_v51, %s1082_s1  ;;  %v349_v51 = vld [vmem:[%s1653_s2 + $0x28] sm:$0xff] }
 0x31b   :  { %v247_v0 = vpop.f32.mrf.mxu0  ;;  %v291_v15 = vpop.f32.mrf.mxu1 }
 0x31c   :  { %330 = vrot.lane.b32.xlu2 %v291_v15, %s1083_s22  ;;  %328 = vrot.lane.b32.xlu0 %v247_v0, %s1083_s22 }
 0x323   :  { %v250_v11 = vpop.f32.mrf.mxu0  ;;  %v294_v12 = vpop.f32.mrf.mxu1 }
 0x324   :  { %343 = vrot.lane.b32.xlu0 %v294_v12, %s1084_s23  ;;  %341 = vrot.lane.b32.xlu1 %v250_v11, %s1084_s23 }
 0x32b   :  { %v297_v16 = vpop.f32.mrf.mxu1  ;;  %v253_v53 = vpop.f32.mrf.mxu0 }
 0x32d   :  { %v684_v18 = vpop.f32.mrf.mxu2  ;;  %v728_v61 = vpop.f32.mrf.mxu3 }
 0x32e   :  { %757 = vrot.lane.b32.xlu2 %v728_v61, %s1082_s1  ;;  %755 = vrot.lane.b32.xlu0 %v684_v18, %s1082_s1  ;;  %v362_v18 = vld [vmem:[%s1653_s2 + $0x38] sm:$0xff] }
 0x333   :  { %v1470_v29 = vpop.f32.mrf.mxu1  ;;  %v1472_v30 = vpop.f32.mrf.mxu0 }
 0x335   :  { %v687_v22 = vpop.f32.mrf.mxu2  ;;  %v731_v28 = vpop.f32.mrf.mxu3 }
 0x336   :  { %356 = vrot.lane.b32.xlu2 %v297_v16, %s1085_s24  ;;  %354 = vrot.lane.b32.xlu0 %v253_v53, %s1085_s24  ;;  %v361_v16 = vld [vmem:[%s1653_s2 + $0x30] sm:$0xff]  ;;  %v1533_v53 = vld [vmem:[%s1653_s2 + $0x40] sm:$0xff] }
 0x33b   :  { %v303_v19 = vpop.f32.mrf.mxu1  ;;  %v259_v31 = vpop.f32.mrf.mxu0 }
 0x33d   :  { %v690_v59 = vpop.f32.mrf.mxu2  ;;  %v734_v25 = vpop.f32.mrf.mxu3 }
 0x33e   :  { %767 = vrot.lane.b32.xlu2 %v731_v28, %s1083_s22  ;;  %779 = vrot.lane.b32.xlu1 %v734_v25, %s1084_s23 }
 0x33f   :  { %765 = vrot.lane.b32.xlu0 %v687_v22, %s1083_s22  ;;  %v1538_v22 = vld [vmem:[%s1653_s2 + $0x48] sm:$0xff] }
 0x343   :  { %v306_v35 = vpop.f32.mrf.mxu1  ;;  %v262_v5 = vpop.f32.mrf.mxu0 }
 0x345   :  { %v693_v32 = vpop.f32.mrf.mxu2  ;;  %v737_v26 = vpop.f32.mrf.mxu3 }
 0x346   :  { %375 = vrot.lane.b32.xlu1 %v303_v19, %s1086_s25  ;;  %777 = vrot.lane.b32.xlu2 %v690_v59, %s1084_s23 }
 0x347   :  { %791 = vrot.lane.b32.xlu0 %v737_v26, %s1085_s24  ;;  %v369_v26 = vmul.f32 %v1533_v53, %v1472_v30 }
 0x34b   :  { %v309_v40 = vpop.f32.mrf.mxu1  ;;  %v265_v13 = vpop.f32.mrf.mxu0 }
 0x34d   :  { %v1476_v23 = vpop.f32.mrf.mxu2  ;;  %v1478_v37 = vpop.f32.mrf.mxu3 }
 0x34e   :  { %373 = vrot.lane.b32.xlu2 %v259_v31, %s1086_s25  ;;  %789 = vrot.lane.b32.xlu1 %v693_v32, %s1085_s24 }
 0x34f   :  { %388 = vrot.lane.b32.xlu0 %v306_v35, %s1087_s26  ;;  %v370_v35 = vmul.f32 %v1538_v22, %v1470_v29 }
 0x353   :  { %v268_v42 = vpop.f32.mrf.mxu0  ;;  %v312_v27 = vpop.f32.mrf.mxu1 }
 0x355   :  { %v699_v41 = vpop.f32.mrf.mxu2  ;;  %v743_v44 = vpop.f32.mrf.mxu3 }
 0x356   :  { %401 = vrot.lane.b32.xlu2 %v309_v40, %s1088_s27  ;;  %386 = vrot.lane.b32.xlu1 %v262_v5, %s1087_s26 }
 0x357   :  { %399 = vrot.lane.b32.xlu0 %v265_v13, %s1088_s27 }
 0x35d   :  { %v702_v47 = vpop.f32.mrf.mxu2  ;;  %v746_v48 = vpop.f32.mrf.mxu3 }
 0x35e   :  { %809 = vrot.lane.b32.xlu2 %v743_v44, %s1086_s25  ;;  %821 = vrot.lane.b32.xlu1 %v746_v48, %s1087_s26 }
 0x35f   :  { %807 = vrot.lane.b32.xlu0 %v699_v41, %s1086_s25 }
 0x365   :  { %v705_v43 = vpop.f32.mrf.mxu2  ;;  %v749_v33 = vpop.f32.mrf.mxu3 }
 0x366   :  { %412 = vrot.lane.b32.xlu2 %v268_v42, %s1089_s28  ;;  %831 = vrot.lane.b32.xlu1 %v705_v43, %s1088_s27 }
 0x367   :  { %833 = vrot.lane.b32.xlu0 %v749_v33, %s1088_s27 }
 0x36d   :  { %v708_v17 = vpop.f32.mrf.mxu2  ;;  %v752_v38 = vpop.f32.mrf.mxu3 }
 0x36e   :  { %819 = vrot.lane.b32.xlu2 %v702_v47, %s1087_s26  ;;  %414 = vrot.lane.b32.xlu1 %v312_v27, %s1089_s28  ;;  %v316_v54 = vpop.permute.xlu2 %315 }
 0x36f   :  { %843 = vrot.lane.b32.xlu0 %v708_v17, %s1089_s28 }
 0x376   :  { %845 = vrot.lane.b32.xlu2 %v752_v38, %s1089_s28  ;;  %v331_v14 = vpop.permute.xlu2 %330 }
 0x386   :  { %v318_v34 = vpop.permute.xlu1 %317 }
 0x387   :  { %v322_v21 = vsel %vm321_vm4, %v316_v54, %v318_v34  ;;  %v323_v45 = vsel %vm321_vm4, %v318_v34, %v316_v54 }
 0x388   :  { %v1482_v57 = vpop.permute.xlu2 %757  ;;  %v326_v24 = vmul.f32 %v1488_v49, %v323_v45  ;;  %v327_v1 = vmul.f32 %v1494_v60, %v322_v21 }
 0x38e   :  { %v329_v50 = vpop.permute.xlu0 %328 }
 0x38f   :  { %v333_v63 = vsel %vm332_vm5, %v329_v50, %v331_v14  ;;  %v334_v39 = vsel %vm332_vm5, %v331_v14, %v329_v50 }
 0x390   :  { %v337_v2 = vmul.f32 %v335_v36, %v334_v39  ;;  %v338_v3 = vmul.f32 %v336_v62, %v333_v63  ;;  %v357_v4 = vpop.permute.xlu2 %356 }
 0x392   :  { %v339_v6 = vadd.f32 %v337_v2, %v326_v24  ;;  %v340_v7 = vadd.f32 %v338_v3, %v327_v1 }
 0x396   :  { %v344_v8 = vpop.permute.xlu0 %343  ;;  %v342_v58 = vpop.permute.xlu1 %341 }
 0x397   :  { %v346_v52 = vsel %vm345_vm6, %v342_v58, %v344_v8  ;;  %v347_v0 = vsel %vm345_vm6, %v344_v8, %v342_v58 }
 0x398   :  { %v768_v46 = vpop.permute.xlu2 %767  ;;  %v350_v11 = vmul.f32 %v348_v10, %v347_v0  ;;  %v351_v12 = vmul.f32 %v349_v51, %v346_v52  ;;  %v393_v52 = vld [vmem:[%s1653_s2 + $0x60] sm:$0xff]  ;;  %v394_v0 = vld [vmem:[%s1653_s2 + $0x68] sm:$0xff] }
 0x39a   :  { %v352_v25 = vadd.f32 %v350_v11, %v339_v6  ;;  %v353_v19 = vadd.f32 %v351_v12, %v340_v7  ;;  %v380_v6 = vld [vmem:[%s1653_s2 + $0x50] sm:$0xff]  ;;  %v381_v7 = vld [vmem:[%s1653_s2 + $0x58] sm:$0xff] }
 0x3a0   :  { %v756_v9 = vpop.permute.xlu0 %755  ;;  %v778_v15 = vpop.permute.xlu2 %777 }
 0x3a1   :  { %v759_v55 = vsel %vm321_vm4, %v756_v9, %v1482_v57  ;;  %v760_v34 = vsel %vm321_vm4, %v1482_v57, %v756_v9 }
 0x3a2   :  { %v763_v63 = vmul.f32 %v760_v34, %v1488_v49  ;;  %v764_v39 = vmul.f32 %v759_v55, %v1494_v60 }
 0x3a8   :  { %v355_v61 = vpop.permute.xlu0 %354  ;;  %v374_v13 = vpop.permute.xlu2 %373 }
 0x3a9   :  { %v359_v28 = vsel %vm358_vm7, %v355_v61, %v357_v4  ;;  %v360_v59 = vsel %vm358_vm7, %v357_v4, %v355_v61 }
 0x3aa   :  { %v363_v31 = vmul.f32 %v361_v16, %v360_v59  ;;  %v364_v32 = vmul.f32 %v362_v18, %v359_v28 }
 0x3ac   :  { %v365_v5 = vadd.f32 %v363_v31, %v352_v25  ;;  %v366_v40 = vadd.f32 %v364_v32, %v353_v19  ;;  %v803_v32 = vmul.f32 %v1476_v23, %v1533_v53  ;;  %v407_v23 = vld [vmem:[%s1653_s2 + $0x78] sm:$0xff] }
 0x3ae   :  { %v371_v41 = vadd.f32 %v369_v26, %v365_v5  ;;  %v372_v44 = vadd.f32 %v370_v35, %v366_v40  ;;  %v804_v26 = vmul.f32 %v1478_v37, %v1538_v22 }
 0x3b0   :  { %v780_v47 = vpop.permute.xlu1 %779  ;;  %v1548_v43 = vpop.permute.xlu2 %401 }
 0x3b1   :  { %v766_v48 = vpop.permute.xlu0 %765  ;;  %v781_v24 = vsel %vm345_vm6, %v778_v15, %v780_v47  ;;  %v782_v1 = vsel %vm345_vm6, %v780_v47, %v778_v15 }
 0x3b2   :  { %v769_v30 = vsel %vm332_vm5, %v766_v48, %v768_v46  ;;  %v770_v29 = vsel %vm332_vm5, %v768_v46, %v766_v48  ;;  %v785_v49 = vmul.f32 %v782_v1, %v348_v10  ;;  %v786_v4 = vmul.f32 %v781_v24, %v349_v51 }
 0x3b3   :  { %v773_v21 = vmul.f32 %v770_v29, %v335_v36  ;;  %v774_v45 = vmul.f32 %v769_v30, %v336_v62 }
 0x3b5   :  { %v775_v36 = vadd.f32 %v773_v21, %v763_v63  ;;  %v776_v62 = vadd.f32 %v774_v45, %v764_v39  ;;  %v419_v63 = vld [vmem:[%s1653_s2 + $0x80] sm:$0xff]  ;;  %v420_v39 = vld [vmem:[%s1653_s2 + $0x88] sm:$0xff] }
 0x3b7   :  { %v787_v10 = vadd.f32 %v785_v49, %v775_v36  ;;  %v788_v51 = vadd.f32 %v786_v4, %v776_v62 }
 0x3b8   :  { %v376_v42 = vpop.permute.xlu1 %375  ;;  %v810_v38 = vpop.permute.xlu2 %809 }
 0x3b9   :  { %v792_v33 = vpop.permute.xlu0 %791  ;;  %v378_v8 = vsel %vm377_vm8, %v374_v13, %v376_v42  ;;  %v379_v46 = vsel %vm377_vm8, %v376_v42, %v374_v13 }
 0x3ba   :  { %v382_v12 = vmul.f32 %v380_v6, %v378_v8  ;;  %v383_v61 = vmul.f32 %v381_v7, %v379_v46 }
 0x3bc   :  { %v384_v5 = vadd.f32 %v382_v12, %v371_v41  ;;  %v385_v40 = vadd.f32 %v383_v61, %v372_v44  ;;  %v1091_v61 = vmov 6  }
 0x3bd   :  { %1039 = vset.pattern.permute.xlu2 %v1091_v61 }
 0x3c0   :  { %v790_v27 = vpop.permute.xlu1 %789  ;;  %v1560_v50 = vpop.permute.xlu2 %412 }
 0x3c1   :  { %v389_v17 = vpop.permute.xlu0 %388  ;;  %v793_v2 = vsel %vm358_vm7, %v790_v27, %v792_v33  ;;  %v794_v57 = vsel %vm358_vm7, %v792_v33, %v790_v27  ;;  %v406_v27 = vld [vmem:[%s1653_s2 + $0x70] sm:$0xff] }
 0x3c2   :  { %v797_v58 = vmul.f32 %v794_v57, %v361_v16  ;;  %v798_v9 = vmul.f32 %v793_v2, %v362_v18 }
 0x3c4   :  { %v799_v16 = vadd.f32 %v797_v58, %v787_v10  ;;  %v800_v18 = vadd.f32 %v798_v9, %v788_v51 }
 0x3c6   :  { %v805_v42 = vadd.f32 %v803_v32, %v799_v16  ;;  %v806_v33 = vadd.f32 %v804_v26, %v800_v18 }
 0x3c8   :  { %v387_v54 = vpop.permute.xlu1 %386  ;;  %v820_v31 = vpop.permute.xlu2 %819 }
 0x3c9   :  { %v400_v14 = vpop.permute.xlu0 %399  ;;  %v391_v15 = vsel %vm390_vm9, %v387_v54, %v389_v17  ;;  %v392_v11 = vsel %vm390_vm9, %v389_v17, %v387_v54 }
 0x3ca   :  { %v395_v25 = vmul.f32 %v393_v52, %v391_v15  ;;  %v396_v19 = vmul.f32 %v394_v0, %v392_v11  ;;  %v404_v37 = vsel %vm403_vm10, %v400_v14, %v1548_v43  ;;  %v405_v53 = vsel %vm403_vm10, %v1548_v43, %v400_v14 }
 0x3cb   :  { %v408_v55 = vmul.f32 %v406_v27, %v404_v37  ;;  %v409_v34 = vmul.f32 %v407_v23, %v405_v53 }
 0x3cc   :  { %v397_v22 = vadd.f32 %v395_v25, %v384_v5  ;;  %v398_v41 = vadd.f32 %v396_v19, %v385_v40 }
 0x3ce   :  { %v410_v1 = vadd.f32 %v408_v55, %v397_v22  ;;  %v411_v2 = vadd.f32 %v409_v34, %v398_v41 }
 0x3d0   :  { %v822_v3 = vpop.permute.xlu1 %821  ;;  %v846_v57 = vpop.permute.xlu2 %845 }
 0x3d1   :  { %v808_v60 = vpop.permute.xlu0 %807  ;;  %v823_v44 = vsel %vm390_vm9, %v820_v31, %v822_v3  ;;  %v824_v17 = vsel %vm390_vm9, %v822_v3, %v820_v31 }
 0x3d2   :  { %v811_v28 = vsel %vm377_vm8, %v808_v60, %v810_v38  ;;  %v812_v59 = vsel %vm377_vm8, %v810_v38, %v808_v60  ;;  %v827_v43 = vmul.f32 %v823_v44, %v393_v52  ;;  %v828_v14 = vmul.f32 %v824_v17, %v394_v0 }
 0x3d3   :  { %v815_v13 = vmul.f32 %v811_v28, %v380_v6  ;;  %v816_v47 = vmul.f32 %v812_v59, %v381_v7 }
 0x3d5   :  { %v817_v30 = vadd.f32 %v815_v13, %v805_v42  ;;  %v818_v29 = vadd.f32 %v816_v47, %v806_v33 }
 0x3d7   :  { %v829_v36 = vadd.f32 %v827_v43, %v817_v30  ;;  %v830_v62 = vadd.f32 %v828_v14, %v818_v29 }
 0x3d8   :  { %v832_v35 = vpop.permute.xlu1 %831 }
 0x3d9   :  { %v834_v48 = vpop.permute.xlu0 %833 }
 0x3da   :  { %v835_v38 = vsel %vm403_vm10, %v832_v35, %v834_v48  ;;  %v836_v54 = vsel %vm403_vm10, %v834_v48, %v832_v35 }
 0x3db   :  { %v839_v21 = vmul.f32 %v835_v38, %v406_v27  ;;  %v840_v45 = vmul.f32 %v836_v54, %v407_v23 }
 0x3dd   :  { %v841_v46 = vadd.f32 %v839_v21, %v829_v36  ;;  %v842_v58 = vadd.f32 %v840_v45, %v830_v62 }
 0x3e0   :  { %v415_v24 = vpop.permute.xlu1 %414 }
 0x3e1   :  { %v417_v3 = vsel %vm416_vm11, %v1560_v50, %v415_v24  ;;  %v418_v49 = vsel %vm416_vm11, %v415_v24, %v1560_v50  ;;  %v844_v4 = vpop.permute.xlu0 %843  ;;  %v1090_v50 = vmov 5  }
 0x3e2   :  { %v421_v60 = vmul.f32 %v419_v63, %v417_v3  ;;  %v422_v6 = vmul.f32 %v420_v39, %v418_v49  ;;  %v847_v7 = vsel %vm416_vm11, %v844_v4, %v846_v57  ;;  %v848_v8 = vsel %vm416_vm11, %v846_v57, %v844_v4  ;;  %1038 = vset.pattern.permute.xlu0 %v1090_v50 }
 0x3e3   :  { %v851_v9 = vmul.f32 %v847_v7, %v419_v63  ;;  %v852_v10 = vmul.f32 %v848_v8, %v420_v39 }
 0x3e4   :  { %v423_v51 = vadd.f32 %v421_v60, %v410_v1  ;;  %v424_v52 = vadd.f32 %v422_v6, %v411_v2 }
 0x3e5   :  { %v853_v0 = vadd.f32 %v851_v9, %v841_v46  ;;  %v854_v15 = vadd.f32 %v852_v10, %v842_v58 }
 0x3e6   :  { %v425_v11 = vadd.f32 %v424_v52, %v423_v51 }
 0x3e7   :  { %v855_v12 = vadd.f32 %v854_v15, %v853_v0 }
 0x3e8   :  { %426 = vadd.xlane.f32.xlu1 %v425_v11 }
 0x3e9   :  { %856 = vadd.xlane.f32.xlu0 %v855_v12 }
 0x3fd   :  { %452 = vperm.xlu0 %1038, %v1051_v56  }
 0x405   :  { %1040 = vset.pattern.permute.xlu0 %v1091_v61 }
 0x45b   :  { %v427_v16 = vpop.xlane.xlu1 %426 }
 0x45c   :  { %v428_v18 = vmul.f32 %v427_v16, %v1131_v20  ;;  %v857_v28 = vpop.xlane.xlu0 %856 }
 0x45d   :  { %v858_v59 = vmul.f32 %v857_v28, %v1131_v20 }
 0x45e   :  { %v429_v25 = vsub.f32 %v423_v51, %v428_v18  ;;  %v430_v19 = vsub.f32 %v424_v52, %v428_v18 }
 0x45f   :  { %v859_v31 = vsub.f32 %v853_v0, %v858_v59  ;;  %v860_v32 = vsub.f32 %v854_v15, %v858_v59 }
 0x460   :  { %v431_v26 = vmul.f32 %v429_v25, %v429_v25  ;;  %v432_v35 = vmul.f32 %v430_v19, %v430_v19 }
 0x461   :  { %v861_v5 = vmul.f32 %v859_v31, %v859_v31  ;;  %v862_v40 = vmul.f32 %v860_v32, %v860_v32 }
 0x462   :  { %v433_v13 = vadd.f32 %v432_v35, %v431_v26 }
 0x463   :  { %v863_v47 = vadd.f32 %v862_v40, %v861_v5 }
 0x464   :  { %434 = vadd.xlane.f32.xlu2 %v433_v13 }
 0x465   :  { %864 = vadd.xlane.f32.xlu1 %v863_v47 }
 0x47c   :  { %458 = vperm.xlu2 %1039, %v1051_v56  }
 0x4d7   :  { %v435_v48 = vpop.xlane.xlu2 %434 }
 0x4d8   :  { %v865_v42 = vpop.xlane.xlu1 %864  ;;  %v436_v33 = vmul.f32 %v435_v48, %v1131_v20 }
 0x4d9   :  { %v866_v27 = vmul.f32 %v865_v42, %v1131_v20  ;;  %v453_v20 = vpop.permute.xlu0 %452 }
 0x4da   :  { %v437_v23 = vadd.f32 1e-05, %v436_v33 }
 0x4db   :  { %v867_v37 = vadd.f32 1e-05, %v866_v27 }
 0x4dc   :  { %1047 = vrsqrt.f32 %v437_v23  ;;  %vm444_vm14 = vweird.f32 %v437_v23 }
 0x4dd   :  { %1049 = vrsqrt.f32 %v867_v37  ;;  %vm874_vm15 = vweird.f32 %v867_v37 }
 0x4df   :  { %v459_v1 = vpop.permute.xlu2 %458 }
 0x4e2   :  { %v1048_v53 = vpop.eup %1047 }
 0x4e3   :  { %v1050_v22 = vpop.eup %1049  ;;  %v439_v41 = vmul.f32 %v1048_v53, %v437_v23  ;;  %vm445_vm12 = vweird.f32 %v1048_v53 }
 0x4e4   :  { %v869_v44 = vmul.f32 %v1050_v22, %v867_v37  ;;  %vm875_vm13 = vweird.f32 %v1050_v22  ;;  %vm446_vm0 = vmor %vm444_vm14, %vm445_vm12 }
 0x4e5   :  { %v440_v17 = vmul.f32 %v1048_v53, %v439_v41  ;;  %vm876_vm1 = vmor %vm874_vm15, %vm875_vm13 }
 0x4e6   :  { %v870_v38 = vmul.f32 %v1050_v22, %v869_v44 }
 0x4e7   :  { %v441_v54 = vmul.f32 0.5, %v440_v17 }
 0x4e8   :  { %v871_v30 = vmul.f32 0.5, %v870_v38 }
 0x4e9   :  { %v442_v29 = vsub.f32 1.5, %v441_v54 }
 0x4ea   :  { %v872_v55 = vsub.f32 1.5, %v871_v30 }
 0x4eb   :  { %v443_v34 = vmul.f32 %v1048_v53, %v442_v29 }
 0x4ec   :  { %v873_v43 = vmul.f32 %v1050_v22, %v872_v55 }
 0x4ed   :  { %v447_v14 = vsel %vm446_vm0, %v1048_v53, %v443_v34 }
 0x4ee   :  { %v877_v21 = vsel %vm876_vm1, %v1050_v22, %v873_v43  ;;  %v448_v45 = vmul.f32 %v447_v14, %v429_v25  ;;  %v449_v63 = vmul.f32 %v447_v14, %v430_v19 }
 0x4ef   :  { %v878_v39 = vmul.f32 %v877_v21, %v859_v31  ;;  %v879_v24 = vmul.f32 %v877_v21, %v860_v32 }
 0x4f0   :  { %v455_v2 = vmul.f32 %v453_v20, %v448_v45  ;;  %v456_v57 = vmul.f32 %v453_v20, %v449_v63 }
 0x4f1   :  { %v880_v36 = vmul.f32 %v878_v39, %v453_v20  ;;  %v881_v62 = vmul.f32 %v879_v24, %v453_v20 }
 0x4f2   :  { %v461_v3 = vadd.f32 %v459_v1, %v455_v2  ;;  %v462_v49 = vadd.f32 %v459_v1, %v456_v57 }
 0x4f3   :  { %v882_v4 = vadd.f32 %v880_v36, %v459_v1  ;;  %v883_v60 = vadd.f32 %v881_v62, %v459_v1 }
 0x4f4   :  { %vm463_vm2 = vcmp.gt.f32.partialorder %v461_v3, 0.0  ;;  %vm464_vm3 = vcmp.gt.f32.partialorder %v462_v49, 0.0  ;;  %v465_v6 = vmul.f32 0.01, %v461_v3  ;;  %v466_v7 = vmul.f32 0.01, %v462_v49 }
 0x4f5   :  { %vm884_vm4 = vcmp.gt.f32.partialorder %v882_v4, 0.0  ;;  %vm885_vm5 = vcmp.gt.f32.partialorder %v883_v60, 0.0  ;;  %v886_v8 = vmul.f32 0.01, %v882_v4  ;;  %v887_v46 = vmul.f32 0.01, %v883_v60 }
 0x4f6   :  { %v467_v58 = vsel %vm463_vm2, %v461_v3, %v465_v6  ;;  %v468_v9 = vsel %vm464_vm3, %v462_v49, %v466_v7 }
 0x4f7   :  { %469 = vst [vmem:[#allocation2] sm:$0xff] %v467_v58  ;;  %v888_v10 = vsel %vm884_vm4, %v882_v4, %v886_v8  ;;  %v889_v51 = vsel %vm885_vm5, %v883_v60, %v887_v46 }
 0x4f8   :  { %470 = vst [vmem:[#allocation2 + $0x8] sm:$0xff] %v468_v9 }
 0x4f9   :  { %891 = vst [vmem:[#allocation2 + $0x10] sm:$0xff] %v888_v10 }
 0x4fa   :  { %892 = vst [vmem:[#allocation2 + $0x18] sm:$0xff] %v889_v51 }
 0x4fb   :  { %905 = dma.vmem_to_hbm [thread:$0]  %s898_s13, 512, %s900_s16, [#allocation3], %s1093_s17, %s1093_s17, %s1083_s22  }
 0x4fc   :  { %1076 = dma.done.wait [#allocation3], 512  }
 0x4fd   :  { %1077 = vsyncadd [#allocation3], 4294966784 }
 0x4fe   :  { %910 = vsyncpa [#allocation3], 1 }

</bundles_post_ra>
